<compile_context>
chip_gen: v5e
topology: v5e:2x2
jax: 0.10.0
libtpu: 0.0.40
codegen_flags: <defaults>
</compile_context>

<pallas_src>
import functools
import math

import jax
import jax.numpy as jnp
from jax.experimental import pallas as pl
from jax.experimental.pallas import tpu as pltpu

_VMEM_LIMIT = 32 * 1024 * 1024  # safe on v5e/v6e/v7x for the tile sizes used below


def _pick_tile(dim, target, align):
    """Largest multiple of `align` that divides `dim` and is <= target; else full `dim`."""
    t = (min(dim, target) // align) * align
    while t >= align:
        if dim % t == 0:
            return t
        t -= align
    return dim


def _pick_heads_per_block(n_heads, head_dim):
    """Smallest divisor of n_heads whose packed lane width is a multiple of 128."""
    for cand in range(1, n_heads + 1):
        if n_heads % cand == 0 and (cand * head_dim) % 128 == 0:
            return cand
    return n_heads


# ---------------------------------------------------------------------------
# Linear (+bias, +GELU) — tiled over (M, N), K resident per tile
# ---------------------------------------------------------------------------

def _linear_kernel(x_ref, w_ref, b_ref, o_ref, *, activation):
    acc = jnp.dot(x_ref[...], w_ref[...], preferred_element_type=jnp.float32)
    acc = acc + b_ref[...].astype(jnp.float32)
    if activation == "gelu":
        # TODO(synk): HF DistilBERT uses exact erf-GELU; tanh approximation used in-kernel.
        c = math.sqrt(2.0 / math.pi)
        acc = 0.5 * acc * (1.0 + jnp.tanh(c * (acc + 0.044715 * acc * acc * acc)))
    o_ref[...] = acc.astype(o_ref.dtype)


def linear(x, w, b, activation=None, tm=256, tn=256):
    """y = x @ w + b  (w stored as (in, out)); bf16 in/out, f32 accumulation."""
    M, K = x.shape
    N = w.shape[1]
    tm = _pick_tile(M, tm, 8)
    tn = _pick_tile(N, tn, 128)
    return pl.pallas_call(
        functools.partial(_linear_kernel, activation=activation),
        out_shape=jax.ShapeDtypeStruct((M, N), x.dtype),
        grid=(M // tm, N // tn),
        in_specs=[
            pl.BlockSpec((tm, K), lambda i, j: (i, 0)),
            pl.BlockSpec((K, tn), lambda i, j: (0, j)),
            pl.BlockSpec((1, tn), lambda i, j: (0, j)),
        ],
        out_specs=pl.BlockSpec((tm, tn), lambda i, j: (i, j)),
        compiler_params=pltpu.CompilerParams(
            dimension_semantics=("parallel", "parallel"),
            vmem_limit_bytes=_VMEM_LIMIT,
        ),
    )(x, w, b.reshape(1, N))


# ---------------------------------------------------------------------------
# Fused residual-add + LayerNorm — row tiled
# ---------------------------------------------------------------------------

def _add_layernorm_kernel(x_ref, r_ref, g_ref, b_ref, o_ref, *, eps):
    x = x_ref[...].astype(jnp.float32) + r_ref[...].astype(jnp.float32)
    mean = jnp.mean(x, axis=-1, keepdims=True)
    xc = x - mean
    var = jnp.mean(xc * xc, axis=-1, keepdims=True)
    y = xc * jax.lax.rsqrt(var + eps)
    o_ref[...] = (y * g_ref[...] + b_ref[...]).astype(o_ref.dtype)


def add_layernorm(x, res, gamma, beta, eps=1e-12, tm=512):
    """LayerNorm(x + res) * gamma + beta over the last axis (DistilBERT eps=1e-12)."""
    M, D = x.shape
    tm = _pick_tile(M, tm, 8)
    return pl.pallas_call(
        functools.partial(_add_layernorm_kernel, eps=eps),
        out_shape=jax.ShapeDtypeStruct((M, D), x.dtype),
        grid=(M // tm,),
        in_specs=[
            pl.BlockSpec((tm, D), lambda i: (i, 0)),
            pl.BlockSpec((tm, D), lambda i: (i, 0)),
            pl.BlockSpec((1, D), lambda i: (0, 0)),
            pl.BlockSpec((1, D), lambda i: (0, 0)),
        ],
        out_specs=pl.BlockSpec((tm, D), lambda i: (i, 0)),
        compiler_params=pltpu.CompilerParams(
            dimension_semantics=("parallel",),
            vmem_limit_bytes=_VMEM_LIMIT,
        ),
    )(x, res, gamma.reshape(1, D), beta.reshape(1, D))


# ---------------------------------------------------------------------------
# Multi-head attention — reads head slices of the (B, S, 3D) QKV slab directly,
# processes `heads_per_block` heads per grid step (lane-dense 128+ wide output).
# ---------------------------------------------------------------------------

def _attention_kernel(q_ref, k_ref, v_ref, bias_ref, o_ref, *,
                      scale, heads_per_block, head_dim):
    bias = bias_ref[...].astype(jnp.float32)        # (1, S) additive: 0 keep / -1e30 masked
    parts = []
    for h in range(heads_per_block):                # static unroll over packed heads
        sl = slice(h * head_dim, (h + 1) * head_dim)
        qh = q_ref[:, sl]                           # (S, dh) bf16
        kh = k_ref[:, sl]
        vh = v_ref[:, sl]
        s = jax.lax.dot_general(qh, kh, (((1,), (1,)), ((), ())),
                                preferred_element_type=jnp.float32) * scale
        s = s + bias                                # broadcast over query rows
        m = jnp.max(s, axis=-1, keepdims=True)
        p = jnp.exp(s - m)
        attn = p * pl.reciprocal(jnp.sum(p, axis=-1, keepdims=True), approx=True)
        parts.append(jnp.dot(attn.astype(vh.dtype), vh,
                             preferred_element_type=jnp.float32))
    ctx = jnp.concatenate(parts, axis=-1)           # (S, hp*dh) — single lane-dense store
    o_ref[...] = ctx.astype(o_ref.dtype)


def mha_attention(qkv, mask_bias, *, n_heads, head_dim, heads_per_block):
    """qkv: (B, S, 3D) with columns [Q | K | V]; mask_bias: (B, 1, S) additive bias."""
    B, S, threeD = qkv.shape
    D = threeD // 3
    hp = heads_per_block
    n_groups = n_heads // hp
    gdh = hp * head_dim                              # lane width per block (>=128 at real dims)

    return pl.pallas_call(
        functools.partial(_attention_kernel, scale=1.0 / math.sqrt(head_dim),
                          heads_per_block=hp, head_dim=head_dim),
        out_shape=jax.ShapeDtypeStruct((B, S, D), qkv.dtype),
        grid=(B, n_groups),
        in_specs=[
            pl.BlockSpec((None, S, gdh), lambda b, g: (b, 0, g)),                  # Q cols
            pl.BlockSpec((None, S, gdh), lambda b, g: (b, 0, n_groups + g)),       # K cols
            pl.BlockSpec((None, S, gdh), lambda b, g: (b, 0, 2 * n_groups + g)),   # V cols
            pl.BlockSpec((None, 1, S), lambda b, g: (b, 0, 0)),                    # mask bias
        ],
        out_specs=pl.BlockSpec((None, S, gdh), lambda b, g: (b, 0, g)),
        compiler_params=pltpu.CompilerParams(
            dimension_semantics=("parallel", "parallel"),
            vmem_limit_bytes=_VMEM_LIMIT,
        ),
    )(qkv, qkv, qkv, mask_bias)


# ---------------------------------------------------------------------------
# Parameter init (deterministic, synthetic — no checkpoint loading)
# ---------------------------------------------------------------------------

def init_params(key, vocab_size, max_pos, dim, ffn_dim, n_layers, n_classes):
    keys = jax.random.split(key, 3 + n_layers)

    def dense(k, shape, scale=0.02):
        return (jax.random.normal(k, shape, jnp.float32) * scale).astype(jnp.bfloat16)

    params = {
        "word_emb": dense(keys[0], (vocab_size, dim)),
        "pos_emb": dense(keys[1], (max_pos, dim)),
        "emb_ln_g": jnp.ones((dim,), jnp.float32),
        "emb_ln_b": jnp.zeros((dim,), jnp.float32),
        "head_w": jax.random.normal(keys[2], (dim, n_classes), jnp.float32) * 0.02,
        "head_b": jnp.zeros((n_classes,), jnp.float32),
        "layers": [],
    }
    for l in range(n_layers):
        lk = jax.random.split(keys[3 + l], 4)
        params["layers"].append({
            "wqkv": dense(lk[0], (dim, 3 * dim)),          # fused [Q | K | V] projection
            "bqkv": jnp.zeros((3 * dim,), jnp.float32),
            "wo": dense(lk[1], (dim, dim)), "bo": jnp.zeros((dim,), jnp.float32),
            "ln1_g": jnp.ones((dim,), jnp.float32), "ln1_b": jnp.zeros((dim,), jnp.float32),
            "w1": dense(lk[2], (dim, ffn_dim)), "b1": jnp.zeros((ffn_dim,), jnp.float32),
            "w2": dense(lk[3], (ffn_dim, dim)), "b2": jnp.zeros((dim,), jnp.float32),
            "ln2_g": jnp.ones((dim,), jnp.float32), "ln2_b": jnp.zeros((dim,), jnp.float32),
        })
    return params


# ---------------------------------------------------------------------------
# Forward pass (mirrors DistilBERTClass.forward)
# ---------------------------------------------------------------------------

def distilbert_class_forward(params, input_ids, attention_mask, token_type_ids, *, n_heads):
    del token_type_ids  # DistilBERT ignores it, matching the PyTorch module
    B, S = input_ids.shape
    D = params["word_emb"].shape[1]
    dh = D // n_heads
    hp = _pick_heads_per_block(n_heads, dh)

    # --- embeddings: word + position, fused add + LayerNorm ---
    word = jnp.take(params["word_emb"], input_ids, axis=0)            # (B, S, D) bf16
    pos = jnp.broadcast_to(params["pos_emb"][:S][None], (B, S, D))
    h = add_layernorm(word.reshape(B * S, D), pos.reshape(B * S, D),
                      params["emb_ln_g"], params["emb_ln_b"])          # (B*S, D) bf16

    # additive attention bias: 0 where attended, -1e30 where masked
    mask_bias = ((1.0 - attention_mask.astype(jnp.float32)) * -1e30).reshape(B, 1, S)

    for layer in params["layers"]:
        x2 = h                                                         # residual, (B*S, D)
        qkv = linear(x2, layer["wqkv"], layer["bqkv"])                 # (B*S, 3D), one GEMM
        ctx = mha_attention(qkv.reshape(B, S, 3 * D), mask_bias,
                            n_heads=n_heads, head_dim=dh, heads_per_block=hp)
        attn_out = linear(ctx.reshape(B * S, D), layer["wo"], layer["bo"])
        h1 = add_layernorm(attn_out, x2, layer["ln1_g"], layer["ln1_b"])

        ff = linear(h1, layer["w1"], layer["b1"], activation="gelu")
        ff = linear(ff, layer["w2"], layer["b2"])
        h = add_layernorm(ff, h1, layer["ln2_g"], layer["ln2_b"])

    hidden_state = h.reshape(B, S, D)
    pooler = hidden_state[:, 0]                                        # CLS token, (B, D)
    # Tiny (B, n_classes) head: pallas_call fixed overhead regime -> plain JAX.
    logits = pooler.astype(jnp.float32) @ params["head_w"] + params["head_b"]
    return logits


# ---------------------------------------------------------------------------
# Main
# ---------------------------------------------------------------------------

if __name__ == "__main__":
    # Small synthetic config (real DistilBERT: dim=768, 12 heads, head_dim=64, ffn=3072, 6 layers).
    # head_dim kept at 64 as in the real model so attention head packing is lane-aligned.
    B, S = 2, 16
    VOCAB, MAX_POS = 128, 64
    DIM, HEADS, FFN, LAYERS = 128, 2, 512, 2
    N_CLASSES = 3

    key = jax.random.PRNGKey(0)
    pkey, ikey = jax.random.split(key)
    params = init_params(pkey, VOCAB, MAX_POS, DIM, FFN, LAYERS, N_CLASSES)

    input_ids = jax.random.randint(ikey, (B, S), 0, VOCAB, dtype=jnp.int32)
    attention_mask = jnp.ones((B, S), jnp.int32).at[1, S - 4:].set(0)  # pad tail of example 1
    token_type_ids = jnp.zeros((B, S), jnp.int32)

    fwd = jax.jit(functools.partial(distilbert_class_forward, n_heads=HEADS))
    logits = fwd(params, input_ids, attention_mask, token_type_ids)
    logits = jax.block_until_ready(logits)
    assert logits.shape == (B, N_CLASSES)
    assert bool(jnp.all(jnp.isfinite(logits)))
    print("KERNEL_OK")
</pallas_src>

<mosaic_0001>
module attributes {stable_mosaic.version = 11 : i64} {
  func.func @_linear_kernel(%arg0: i32, %arg1: i32, %arg2: memref<32x128xbf16, #tpu.memory_space<vmem>>, %arg3: memref<128x128xbf16, #tpu.memory_space<vmem>>, %arg4: memref<1x128xf32, #tpu.memory_space<vmem>>, %arg5: memref<32x128xbf16, #tpu.memory_space<vmem>>) attributes {dimension_semantics = [#tpu.dimension_semantics<parallel>, #tpu.dimension_semantics<parallel>], iteration_bounds = array<i64: 1, 3>, scalar_prefetch = 0 : i64, scratch_operands = 0 : i64, tpu.core_type = #tpu.core_type<tc>, window_params = [{transform_indices = @transform_0, window_bounds = array<i64: 32, 128>}, {transform_indices = @transform_1, window_bounds = array<i64: 128, 128>}, {transform_indices = @transform_2, window_bounds = array<i64: 1, 128>}, {transform_indices = @transform_3, window_bounds = array<i64: 32, 128>}]} {
    %c0 = arith.constant 0 : index
    %c0_0 = arith.constant 0 : index
    %0 = vector.load %arg2[%c0, %c0_0] : memref<32x128xbf16, #tpu.memory_space<vmem>>, vector<32x128xbf16>
    %c0_1 = arith.constant 0 : index
    %c0_2 = arith.constant 0 : index
    %1 = vector.load %arg3[%c0_1, %c0_2] : memref<128x128xbf16, #tpu.memory_space<vmem>>, vector<128x128xbf16>
    %cst = arith.constant dense<0.000000e+00> : vector<32x128xf32>
    %2 = tpu.matmul %0, %1, %cst {dimension_numbers = #tpu.dot_dimension_numbers<[1], [0], [0], [1], [0, 0, 1, 1], [], []>} : vector<32x128xbf16>, vector<128x128xbf16>, vector<32x128xf32> -> vector<32x128xf32>
    %c0_3 = arith.constant 0 : index
    %c0_4 = arith.constant 0 : index
    %3 = vector.load %arg4[%c0_3, %c0_4] : memref<1x128xf32, #tpu.memory_space<vmem>>, vector<1x128xf32>
    %4 = vector.broadcast %3 : vector<1x128xf32> to vector<32x128xf32>
    %5 = arith.addf %2, %4 : vector<32x128xf32>
    %6 = arith.truncf %5 : vector<32x128xf32> to vector<32x128xbf16>
    %c0_5 = arith.constant 0 : index
    %c0_6 = arith.constant 0 : index
    %7 = vector.load %arg5[%c0_5, %c0_6] : memref<32x128xbf16, #tpu.memory_space<vmem>>, vector<32x128xbf16>
    tpu.vector_store %arg5[%c0_5, %c0_6], %6 {strides = array<i32>} : memref<32x128xbf16, #tpu.memory_space<vmem>>, vector<32x128xbf16>,
    return
  }
  func.func @transform_0(%arg0: i32, %arg1: i32) -> (i32, i32) {
    %c0_i32 = arith.constant 0 : i32
    %c0_i32_0 = arith.constant 0 : i32
    return %arg0, %c0_i32 : i32, i32
  }
  func.func @transform_1(%arg0: i32, %arg1: i32) -> (i32, i32) {
    %c0_i32 = arith.constant 0 : i32
    %c0_i32_0 = arith.constant 0 : i32
    return %c0_i32, %arg1 : i32, i32
  }
  func.func @transform_2(%arg0: i32, %arg1: i32) -> (i32, i32) {
    %c0_i32 = arith.constant 0 : i32
    %c0_i32_0 = arith.constant 0 : i32
    return %c0_i32, %arg1 : i32, i32
  }
  func.func @transform_3(%arg0: i32, %arg1: i32) -> (i32, i32) {
    %c0_i32 = arith.constant 0 : i32
    return %arg0, %arg1 : i32, i32
  }
}

module attributes {stable_mosaic.version = 11 : i64} {
  func.func @_add_layernorm_kernel(%arg0: i32, %arg1: memref<32x128xbf16, #tpu.memory_space<vmem>>, %arg2: memref<32x128xbf16, #tpu.memory_space<vmem>>, %arg3: memref<1x128xf32, #tpu.memory_space<vmem>>, %arg4: memref<1x128xf32, #tpu.memory_space<vmem>>, %arg5: memref<32x128xbf16, #tpu.memory_space<vmem>>) attributes {dimension_semantics = [#tpu.dimension_semantics<parallel>], iteration_bounds = array<i64: 1>, scalar_prefetch = 0 : i64, scratch_operands = 0 : i64, tpu.core_type = #tpu.core_type<tc>, window_params = [{transform_indices = @transform_0, window_bounds = array<i64: 32, 128>}, {transform_indices = @transform_1, window_bounds = array<i64: 32, 128>}, {pipeline_mode = #tpu.pipeline_mode<synchronous>, transform_indices = @transform_2, window_bounds = array<i64: 1, 128>}, {pipeline_mode = #tpu.pipeline_mode<synchronous>, transform_indices = @transform_3, window_bounds = array<i64: 1, 128>}, {transform_indices = @transform_4, window_bounds = array<i64: 32, 128>}]} {
    %c0 = arith.constant 0 : index
    %c0_0 = arith.constant 0 : index
    %0 = vector.load %arg1[%c0, %c0_0] : memref<32x128xbf16, #tpu.memory_space<vmem>>, vector<32x128xbf16>
    %1 = arith.extf %0 : vector<32x128xbf16> to vector<32x128xf32>
    %c0_1 = arith.constant 0 : index
    %c0_2 = arith.constant 0 : index
    %2 = vector.load %arg2[%c0_1, %c0_2] : memref<32x128xbf16, #tpu.memory_space<vmem>>, vector<32x128xbf16>
    %3 = arith.extf %2 : vector<32x128xbf16> to vector<32x128xf32>
    %4 = arith.addf %1, %3 : vector<32x128xf32>
    %cst = arith.constant dense<0.000000e+00> : vector<32xf32>
    %5 = vector.multi_reduction <add>, %4, %cst [1] : vector<32x128xf32> to vector<32xf32>
    %6 = vector.shape_cast %5 : vector<32xf32> to vector<32x1xf32>
    %cst_3 = arith.constant 1.280000e+02 : f32
    %7 = vector.broadcast %cst_3 : f32 to vector<32x1xf32>
    %8 = arith.divf %6, %7 : vector<32x1xf32>
    %9 = vector.broadcast %8 : vector<32x1xf32> to vector<32x128xf32>
    %10 = arith.subf %4, %9 : vector<32x128xf32>
    %11 = arith.mulf %10, %10 : vector<32x128xf32>
    %cst_4 = arith.constant dense<0.000000e+00> : vector<32xf32>
    %12 = vector.multi_reduction <add>, %11, %cst_4 [1] : vector<32x128xf32> to vector<32xf32>
    %13 = vector.shape_cast %12 : vector<32xf32> to vector<32x1xf32>
    %cst_5 = arith.constant 1.280000e+02 : f32
    %14 = vector.broadcast %cst_5 : f32 to vector<32x1xf32>
    %15 = arith.divf %13, %14 : vector<32x1xf32>
    %cst_6 = arith.constant 9.99999996E-13 : f32
    %16 = vector.broadcast %cst_6 : f32 to vector<32x1xf32>
    %17 = arith.addf %15, %16 : vector<32x1xf32>
    %18 = math.rsqrt %17 : vector<32x1xf32>
    %19 = vector.broadcast %18 : vector<32x1xf32> to vector<32x128xf32>
    %20 = arith.mulf %10, %19 : vector<32x128xf32>
    %c0_7 = arith.constant 0 : index
    %c0_8 = arith.constant 0 : index
    %21 = vector.load %arg3[%c0_7, %c0_8] : memref<1x128xf32, #tpu.memory_space<vmem>>, vector<1x128xf32>
    %22 = vector.broadcast %21 : vector<1x128xf32> to vector<32x128xf32>
    %23 = arith.mulf %20, %22 : vector<32x128xf32>
    %c0_9 = arith.constant 0 : index
    %c0_10 = arith.constant 0 : index
    %24 = vector.load %arg4[%c0_9, %c0_10] : memref<1x128xf32, #tpu.memory_space<vmem>>, vector<1x128xf32>
    %25 = vector.broadcast %24 : vector<1x128xf32> to vector<32x128xf32>
    %26 = arith.addf %23, %25 : vector<32x128xf32>
    %27 = arith.truncf %26 : vector<32x128xf32> to vector<32x128xbf16>
    %c0_11 = arith.constant 0 : index
    %c0_12 = arith.constant 0 : index
    %28 = vector.load %arg5[%c0_11, %c0_12] : memref<32x128xbf16, #tpu.memory_space<vmem>>, vector<32x128xbf16>
    tpu.vector_store %arg5[%c0_11, %c0_12], %27 {strides = array<i32>} : memref<32x128xbf16, #tpu.memory_space<vmem>>, vector<32x128xbf16>,
    return
  }
  func.func @transform_0(%arg0: i32) -> (i32, i32) {
    %c0_i32 = arith.constant 0 : i32
    %c0_i32_0 = arith.constant 0 : i32
    return %arg0, %c0_i32 : i32, i32
  }
  func.func @transform_1(%arg0: i32) -> (i32, i32) {
    %c0_i32 = arith.constant 0 : i32
    %c0_i32_0 = arith.constant 0 : i32
    return %arg0, %c0_i32 : i32, i32
  }
  func.func @transform_2(%arg0: i32) -> (i32, i32) {
    %c0_i32 = arith.constant 0 : i32
    %c0_i32_0 = arith.constant 0 : i32
    %c0_i32_1 = arith.constant 0 : i32
    return %c0_i32, %c0_i32_0 : i32, i32
  }
  func.func @transform_3(%arg0: i32) -> (i32, i32) {
    %c0_i32 = arith.constant 0 : i32
    %c0_i32_0 = arith.constant 0 : i32
    %c0_i32_1 = arith.constant 0 : i32
    return %c0_i32, %c0_i32_0 : i32, i32
  }
  func.func @transform_4(%arg0: i32) -> (i32, i32) {
    %c0_i32 = arith.constant 0 : i32
    %c0_i32_0 = arith.constant 0 : i32
    return %arg0, %c0_i32 : i32, i32
  }
}

module attributes {stable_mosaic.version = 11 : i64} {
  func.func @_attention_kernel(%arg0: i32, %arg1: i32, %arg2: memref<1x16x128xbf16, #tpu.memory_space<vmem>>, %arg3: memref<1x16x128xbf16, #tpu.memory_space<vmem>>, %arg4: memref<1x16x128xbf16, #tpu.memory_space<vmem>>, %arg5: memref<1x1x16xf32, #tpu.memory_space<vmem>>, %arg6: memref<1x16x128xbf16, #tpu.memory_space<vmem>>) attributes {dimension_semantics = [#tpu.dimension_semantics<parallel>, #tpu.dimension_semantics<parallel>], iteration_bounds = array<i64: 2, 1>, scalar_prefetch = 0 : i64, scratch_operands = 0 : i64, tpu.core_type = #tpu.core_type<tc>, window_params = [{transform_indices = @transform_0, window_bounds = array<i64: 1, 16, 128>}, {transform_indices = @transform_1, window_bounds = array<i64: 1, 16, 128>}, {transform_indices = @transform_2, window_bounds = array<i64: 1, 16, 128>}, {transform_indices = @transform_3, window_bounds = array<i64: 1, 1, 16>}, {transform_indices = @transform_4, window_bounds = array<i64: 1, 16, 128>}]} {
    %c0 = arith.constant 0 : index
    %c0_0 = arith.constant 0 : index
    %c0_1 = arith.constant 0 : index
    %0 = vector.load %arg5[%c0, %c0_0, %c0_1] : memref<1x1x16xf32, #tpu.memory_space<vmem>>, vector<1x1x16xf32>
    %1 = vector.shape_cast %0 : vector<1x1x16xf32> to vector<1x16xf32>
    %c0_2 = arith.constant 0 : index
    %c0_3 = arith.constant 0 : index
    %c0_4 = arith.constant 0 : index
    %2 = vector.load %arg2[%c0_2, %c0_3, %c0_4] : memref<1x16x128xbf16, #tpu.memory_space<vmem>>, vector<1x16x64xbf16>
    %3 = vector.shape_cast %2 : vector<1x16x64xbf16> to vector<16x64xbf16>
    %c0_5 = arith.constant 0 : index
    %c0_6 = arith.constant 0 : index
    %c0_7 = arith.constant 0 : index
    %4 = vector.load %arg3[%c0_5, %c0_6, %c0_7] : memref<1x16x128xbf16, #tpu.memory_space<vmem>>, vector<1x16x64xbf16>
    %5 = vector.shape_cast %4 : vector<1x16x64xbf16> to vector<16x64xbf16>
    %c0_8 = arith.constant 0 : index
    %c0_9 = arith.constant 0 : index
    %c0_10 = arith.constant 0 : index
    %6 = vector.load %arg4[%c0_8, %c0_9, %c0_10] : memref<1x16x128xbf16, #tpu.memory_space<vmem>>, vector<1x16x64xbf16>
    %7 = vector.shape_cast %6 : vector<1x16x64xbf16> to vector<16x64xbf16>
    %cst = arith.constant dense<0.000000e+00> : vector<16x16xf32>
    %8 = tpu.matmul %3, %5, %cst {dimension_numbers = #tpu.dot_dimension_numbers<[1], [1], [0], [0], [0, 0, 1, 0], [], []>} : vector<16x64xbf16>, vector<16x64xbf16>, vector<16x16xf32> -> vector<16x16xf32>
    %cst_11 = arith.constant 1.250000e-01 : f32
    %9 = vector.broadcast %cst_11 : f32 to vector<16x16xf32>
    %10 = arith.mulf %8, %9 : vector<16x16xf32>
    %11 = vector.broadcast %1 : vector<1x16xf32> to vector<16x16xf32>
    %12 = arith.addf %10, %11 : vector<16x16xf32>
    %cst_12 = arith.constant dense<0xFF800000> : vector<16xf32>
    %13 = vector.multi_reduction <maximumf>, %12, %cst_12 [1] : vector<16x16xf32> to vector<16xf32>
    %14 = vector.shape_cast %13 : vector<16xf32> to vector<16x1xf32>
    %15 = vector.broadcast %14 : vector<16x1xf32> to vector<16x16xf32>
    %16 = arith.subf %12, %15 : vector<16x16xf32>
    %17 = math.exp %16 : vector<16x16xf32>
    %cst_13 = arith.constant dense<0.000000e+00> : vector<16xf32>
    %18 = vector.multi_reduction <add>, %17, %cst_13 [1] : vector<16x16xf32> to vector<16xf32>
    %19 = vector.shape_cast %18 : vector<16xf32> to vector<16x1xf32>
    %20 = tpu.reciprocal %19 {approx = true} : vector<16x1xf32> -> vector<16x1xf32>
    %21 = vector.broadcast %20 : vector<16x1xf32> to vector<16x16xf32>
    %22 = arith.mulf %17, %21 : vector<16x16xf32>
    %23 = arith.truncf %22 : vector<16x16xf32> to vector<16x16xbf16>
    %cst_14 = arith.constant dense<0.000000e+00> : vector<16x64xf32>
    %24 = tpu.matmul %23, %7, %cst_14 {dimension_numbers = #tpu.dot_dimension_numbers<[1], [0], [0], [1], [0, 0, 1, 1], [], []>} : vector<16x16xbf16>, vector<16x64xbf16>, vector<16x64xf32> -> vector<16x64xf32>
    %c0_15 = arith.constant 0 : index
    %c0_16 = arith.constant 0 : index
    %c64 = arith.constant 64 : index
    %25 = vector.load %arg2[%c0_15, %c0_16, %c64] : memref<1x16x128xbf16, #tpu.memory_space<vmem>>, vector<1x16x64xbf16>
    %26 = vector.shape_cast %25 : vector<1x16x64xbf16> to vector<16x64xbf16>
    %c0_17 = arith.constant 0 : index
    %c0_18 = arith.constant 0 : index
    %c64_19 = arith.constant 64 : index
    %27 = vector.load %arg3[%c0_17, %c0_18, %c64_19] : memref<1x16x128xbf16, #tpu.memory_space<vmem>>, vector<1x16x64xbf16>
    %28 = vector.shape_cast %27 : vector<1x16x64xbf16> to vector<16x64xbf16>
    %c0_20 = arith.constant 0 : index
    %c0_21 = arith.constant 0 : index
    %c64_22 = arith.constant 64 : index
    %29 = vector.load %arg4[%c0_20, %c0_21, %c64_22] : memref<1x16x128xbf16, #tpu.memory_space<vmem>>, vector<1x16x64xbf16>
    %30 = vector.shape_cast %29 : vector<1x16x64xbf16> to vector<16x64xbf16>
    %cst_23 = arith.constant dense<0.000000e+00> : vector<16x16xf32>
    %31 = tpu.matmul %26, %28, %cst_23 {dimension_numbers = #tpu.dot_dimension_numbers<[1], [1], [0], [0], [0, 0, 1, 0], [], []>} : vector<16x64xbf16>, vector<16x64xbf16>, vector<16x16xf32> -> vector<16x16xf32>
    %cst_24 = arith.constant 1.250000e-01 : f32
    %32 = vector.broadcast %cst_24 : f32 to vector<16x16xf32>
    %33 = arith.mulf %31, %32 : vector<16x16xf32>
    %34 = vector.broadcast %1 : vector<1x16xf32> to vector<16x16xf32>
    %35 = arith.addf %33, %34 : vector<16x16xf32>
    %cst_25 = arith.constant dense<0xFF800000> : vector<16xf32>
    %36 = vector.multi_reduction <maximumf>, %35, %cst_25 [1] : vector<16x16xf32> to vector<16xf32>
    %37 = vector.shape_cast %36 : vector<16xf32> to vector<16x1xf32>
    %38 = vector.broadcast %37 : vector<16x1xf32> to vector<16x16xf32>
    %39 = arith.subf %35, %38 : vector<16x16xf32>
    %40 = math.exp %39 : vector<16x16xf32>
    %cst_26 = arith.constant dense<0.000000e+00> : vector<16xf32>
    %41 = vector.multi_reduction <add>, %40, %cst_26 [1] : vector<16x16xf32> to vector<16xf32>
    %42 = vector.shape_cast %41 : vector<16xf32> to vector<16x1xf32>
    %43 = tpu.reciprocal %42 {approx = true} : vector<16x1xf32> -> vector<16x1xf32>
    %44 = vector.broadcast %43 : vector<16x1xf32> to vector<16x16xf32>
    %45 = arith.mulf %40, %44 : vector<16x16xf32>
    %46 = arith.truncf %45 : vector<16x16xf32> to vector<16x16xbf16>
    %cst_27 = arith.constant dense<0.000000e+00> : vector<16x64xf32>
    %47 = tpu.matmul %46, %30, %cst_27 {dimension_numbers = #tpu.dot_dimension_numbers<[1], [0], [0], [1], [0, 0, 1, 1], [], []>} : vector<16x16xbf16>, vector<16x64xbf16>, vector<16x64xf32> -> vector<16x64xf32>
    %48 = tpu.concatenate %24, %47 in 1 : vector<16x64xf32>, vector<16x64xf32> -> vector<16x128xf32>
    %49 = arith.truncf %48 : vector<16x128xf32> to vector<16x128xbf16>
    %c0_28 = arith.constant 0 : index
    %c0_29 = arith.constant 0 : index
    %c0_30 = arith.constant 0 : index
    %50 = vector.load %arg6[%c0_28, %c0_29, %c0_30] : memref<1x16x128xbf16, #tpu.memory_space<vmem>>, vector<1x16x128xbf16>
    %51 = vector.shape_cast %50 : vector<1x16x128xbf16> to vector<16x128xbf16>
    %52 = vector.shape_cast %49 : vector<16x128xbf16> to vector<1x16x128xbf16>
    tpu.vector_store %arg6[%c0_28, %c0_29, %c0_30], %52 {strides = array<i32>} : memref<1x16x128xbf16, #tpu.memory_space<vmem>>, vector<1x16x128xbf16>,
    return
  }
  func.func @transform_0(%arg0: i32, %arg1: i32) -> (i32, i32, i32) {
    %c0_i32 = arith.constant 0 : i32
    %c0_i32_0 = arith.constant 0 : i32
    return %arg0, %c0_i32, %arg1 : i32, i32, i32
  }
  func.func @transform_1(%arg0: i32, %arg1: i32) -> (i32, i32, i32) {
    %c1_i32 = arith.constant 1 : i32
    %0 = arith.addi %c1_i32, %arg1 : i32
    %c0_i32 = arith.constant 0 : i32
    %c0_i32_0 = arith.constant 0 : i32
    return %arg0, %c0_i32, %0 : i32, i32, i32
  }
  func.func @transform_2(%arg0: i32, %arg1: i32) -> (i32, i32, i32) {
    %c2_i32 = arith.constant 2 : i32
    %0 = arith.addi %c2_i32, %arg1 : i32
    %c0_i32 = arith.constant 0 : i32
    %c0_i32_0 = arith.constant 0 : i32
    return %arg0, %c0_i32, %0 : i32, i32, i32
  }
  func.func @transform_3(%arg0: i32, %arg1: i32) -> (i32, i32, i32) {
    %c0_i32 = arith.constant 0 : i32
    %c0_i32_0 = arith.constant 0 : i32
    %c0_i32_1 = arith.constant 0 : i32
    return %arg0, %c0_i32, %c0_i32_0 : i32, i32, i32
  }
  func.func @transform_4(%arg0: i32, %arg1: i32) -> (i32, i32, i32) {
    %c0_i32 = arith.constant 0 : i32
    %c0_i32_0 = arith.constant 0 : i32
    return %arg0, %c0_i32, %arg1 : i32, i32, i32
  }
}

module attributes {stable_mosaic.version = 11 : i64} {
  func.func @_linear_kernel(%arg0: i32, %arg1: i32, %arg2: memref<32x128xbf16, #tpu.memory_space<vmem>>, %arg3: memref<128x128xbf16, #tpu.memory_space<vmem>>, %arg4: memref<1x128xf32, #tpu.memory_space<vmem>>, %arg5: memref<32x128xbf16, #tpu.memory_space<vmem>>) attributes {dimension_semantics = [#tpu.dimension_semantics<parallel>, #tpu.dimension_semantics<parallel>], iteration_bounds = array<i64: 1, 1>, scalar_prefetch = 0 : i64, scratch_operands = 0 : i64, tpu.core_type = #tpu.core_type<tc>, window_params = [{transform_indices = @transform_0, window_bounds = array<i64: 32, 128>}, {transform_indices = @transform_1, window_bounds = array<i64: 128, 128>}, {transform_indices = @transform_2, window_bounds = array<i64: 1, 128>}, {transform_indices = @transform_3, window_bounds = array<i64: 32, 128>}]} {
    %c0 = arith.constant 0 : index
    %c0_0 = arith.constant 0 : index
    %0 = vector.load %arg2[%c0, %c0_0] : memref<32x128xbf16, #tpu.memory_space<vmem>>, vector<32x128xbf16>
    %c0_1 = arith.constant 0 : index
    %c0_2 = arith.constant 0 : index
    %1 = vector.load %arg3[%c0_1, %c0_2] : memref<128x128xbf16, #tpu.memory_space<vmem>>, vector<128x128xbf16>
    %cst = arith.constant dense<0.000000e+00> : vector<32x128xf32>
    %2 = tpu.matmul %0, %1, %cst {dimension_numbers = #tpu.dot_dimension_numbers<[1], [0], [0], [1], [0, 0, 1, 1], [], []>} : vector<32x128xbf16>, vector<128x128xbf16>, vector<32x128xf32> -> vector<32x128xf32>
    %c0_3 = arith.constant 0 : index
    %c0_4 = arith.constant 0 : index
    %3 = vector.load %arg4[%c0_3, %c0_4] : memref<1x128xf32, #tpu.memory_space<vmem>>, vector<1x128xf32>
    %4 = vector.broadcast %3 : vector<1x128xf32> to vector<32x128xf32>
    %5 = arith.addf %2, %4 : vector<32x128xf32>
    %6 = arith.truncf %5 : vector<32x128xf32> to vector<32x128xbf16>
    %c0_5 = arith.constant 0 : index
    %c0_6 = arith.constant 0 : index
    %7 = vector.load %arg5[%c0_5, %c0_6] : memref<32x128xbf16, #tpu.memory_space<vmem>>, vector<32x128xbf16>
    tpu.vector_store %arg5[%c0_5, %c0_6], %6 {strides = array<i32>} : memref<32x128xbf16, #tpu.memory_space<vmem>>, vector<32x128xbf16>,
    return
  }
  func.func @transform_0(%arg0: i32, %arg1: i32) -> (i32, i32) {
    %c0_i32 = arith.constant 0 : i32
    %c0_i32_0 = arith.constant 0 : i32
    return %arg0, %c0_i32 : i32, i32
  }
  func.func @transform_1(%arg0: i32, %arg1: i32) -> (i32, i32) {
    %c0_i32 = arith.constant 0 : i32
    %c0_i32_0 = arith.constant 0 : i32
    return %c0_i32, %arg1 : i32, i32
  }
  func.func @transform_2(%arg0: i32, %arg1: i32) -> (i32, i32) {
    %c0_i32 = arith.constant 0 : i32
    %c0_i32_0 = arith.constant 0 : i32
    return %c0_i32, %arg1 : i32, i32
  }
  func.func @transform_3(%arg0: i32, %arg1: i32) -> (i32, i32) {
    %c0_i32 = arith.constant 0 : i32
    return %arg0, %arg1 : i32, i32
  }
}

module attributes {stable_mosaic.version = 11 : i64} {
  func.func @_linear_kernel(%arg0: i32, %arg1: i32, %arg2: memref<32x128xbf16, #tpu.memory_space<vmem>>, %arg3: memref<128x256xbf16, #tpu.memory_space<vmem>>, %arg4: memref<1x256xf32, #tpu.memory_space<vmem>>, %arg5: memref<32x256xbf16, #tpu.memory_space<vmem>>) attributes {dimension_semantics = [#tpu.dimension_semantics<parallel>, #tpu.dimension_semantics<parallel>], iteration_bounds = array<i64: 1, 2>, scalar_prefetch = 0 : i64, scratch_operands = 0 : i64, tpu.core_type = #tpu.core_type<tc>, window_params = [{transform_indices = @transform_0, window_bounds = array<i64: 32, 128>}, {transform_indices = @transform_1, window_bounds = array<i64: 128, 256>}, {transform_indices = @transform_2, window_bounds = array<i64: 1, 256>}, {transform_indices = @transform_3, window_bounds = array<i64: 32, 256>}]} {
    %c0 = arith.constant 0 : index
    %c0_0 = arith.constant 0 : index
    %0 = vector.load %arg2[%c0, %c0_0] : memref<32x128xbf16, #tpu.memory_space<vmem>>, vector<32x128xbf16>
    %c0_1 = arith.constant 0 : index
    %c0_2 = arith.constant 0 : index
    %1 = vector.load %arg3[%c0_1, %c0_2] : memref<128x256xbf16, #tpu.memory_space<vmem>>, vector<128x256xbf16>
    %cst = arith.constant dense<0.000000e+00> : vector<32x256xf32>
    %2 = tpu.matmul %0, %1, %cst {dimension_numbers = #tpu.dot_dimension_numbers<[1], [0], [0], [1], [0, 0, 1, 1], [], []>} : vector<32x128xbf16>, vector<128x256xbf16>, vector<32x256xf32> -> vector<32x256xf32>
    %c0_3 = arith.constant 0 : index
    %c0_4 = arith.constant 0 : index
    %3 = vector.load %arg4[%c0_3, %c0_4] : memref<1x256xf32, #tpu.memory_space<vmem>>, vector<1x256xf32>
    %4 = vector.broadcast %3 : vector<1x256xf32> to vector<32x256xf32>
    %5 = arith.addf %2, %4 : vector<32x256xf32>
    %cst_5 = arith.constant 5.000000e-01 : f32
    %6 = vector.broadcast %cst_5 : f32 to vector<32x256xf32>
    %7 = arith.mulf %6, %5 : vector<32x256xf32>
    %cst_6 = arith.constant 4.471500e-02 : f32
    %8 = vector.broadcast %cst_6 : f32 to vector<32x256xf32>
    %9 = arith.mulf %8, %5 : vector<32x256xf32>
    %10 = arith.mulf %9, %5 : vector<32x256xf32>
    %11 = arith.mulf %10, %5 : vector<32x256xf32>
    %12 = arith.addf %5, %11 : vector<32x256xf32>
    %cst_7 = arith.constant 0.797884583 : f32
    %13 = vector.broadcast %cst_7 : f32 to vector<32x256xf32>
    %14 = arith.mulf %13, %12 : vector<32x256xf32>
    %15 = math.tanh %14 : vector<32x256xf32>
    %cst_8 = arith.constant 1.000000e+00 : f32
    %16 = vector.broadcast %cst_8 : f32 to vector<32x256xf32>
    %17 = arith.addf %16, %15 : vector<32x256xf32>
    %18 = arith.mulf %7, %17 : vector<32x256xf32>
    %19 = arith.truncf %18 : vector<32x256xf32> to vector<32x256xbf16>
    %c0_9 = arith.constant 0 : index
    %c0_10 = arith.constant 0 : index
    %20 = vector.load %arg5[%c0_9, %c0_10] : memref<32x256xbf16, #tpu.memory_space<vmem>>, vector<32x256xbf16>
    tpu.vector_store %arg5[%c0_9, %c0_10], %19 {strides = array<i32>} : memref<32x256xbf16, #tpu.memory_space<vmem>>, vector<32x256xbf16>,
    return
  }
  func.func @transform_0(%arg0: i32, %arg1: i32) -> (i32, i32) {
    %c0_i32 = arith.constant 0 : i32
    %c0_i32_0 = arith.constant 0 : i32
    return %arg0, %c0_i32 : i32, i32
  }
  func.func @transform_1(%arg0: i32, %arg1: i32) -> (i32, i32) {
    %c0_i32 = arith.constant 0 : i32
    %c0_i32_0 = arith.constant 0 : i32
    return %c0_i32, %arg1 : i32, i32
  }
  func.func @transform_2(%arg0: i32, %arg1: i32) -> (i32, i32) {
    %c0_i32 = arith.constant 0 : i32
    %c0_i32_0 = arith.constant 0 : i32
    return %c0_i32, %arg1 : i32, i32
  }
  func.func @transform_3(%arg0: i32, %arg1: i32) -> (i32, i32) {
    %c0_i32 = arith.constant 0 : i32
    return %arg0, %arg1 : i32, i32
  }
}

module attributes {stable_mosaic.version = 11 : i64} {
  func.func @_linear_kernel(%arg0: i32, %arg1: i32, %arg2: memref<32x512xbf16, #tpu.memory_space<vmem>>, %arg3: memref<512x128xbf16, #tpu.memory_space<vmem>>, %arg4: memref<1x128xf32, #tpu.memory_space<vmem>>, %arg5: memref<32x128xbf16, #tpu.memory_space<vmem>>) attributes {dimension_semantics = [#tpu.dimension_semantics<parallel>, #tpu.dimension_semantics<parallel>], iteration_bounds = array<i64: 1, 1>, scalar_prefetch = 0 : i64, scratch_operands = 0 : i64, tpu.core_type = #tpu.core_type<tc>, window_params = [{transform_indices = @transform_0, window_bounds = array<i64: 32, 512>}, {transform_indices = @transform_1, window_bounds = array<i64: 512, 128>}, {transform_indices = @transform_2, window_bounds = array<i64: 1, 128>}, {transform_indices = @transform_3, window_bounds = array<i64: 32, 128>}]} {
    %c0 = arith.constant 0 : index
    %c0_0 = arith.constant 0 : index
    %0 = vector.load %arg2[%c0, %c0_0] : memref<32x512xbf16, #tpu.memory_space<vmem>>, vector<32x512xbf16>
    %c0_1 = arith.constant 0 : index
    %c0_2 = arith.constant 0 : index
    %1 = vector.load %arg3[%c0_1, %c0_2] : memref<512x128xbf16, #tpu.memory_space<vmem>>, vector<512x128xbf16>
    %cst = arith.constant dense<0.000000e+00> : vector<32x128xf32>
    %2 = tpu.matmul %0, %1, %cst {dimension_numbers = #tpu.dot_dimension_numbers<[1], [0], [0], [1], [0, 0, 1, 1], [], []>} : vector<32x512xbf16>, vector<512x128xbf16>, vector<32x128xf32> -> vector<32x128xf32>
    %c0_3 = arith.constant 0 : index
    %c0_4 = arith.constant 0 : index
    %3 = vector.load %arg4[%c0_3, %c0_4] : memref<1x128xf32, #tpu.memory_space<vmem>>, vector<1x128xf32>
    %4 = vector.broadcast %3 : vector<1x128xf32> to vector<32x128xf32>
    %5 = arith.addf %2, %4 : vector<32x128xf32>
    %6 = arith.truncf %5 : vector<32x128xf32> to vector<32x128xbf16>
    %c0_5 = arith.constant 0 : index
    %c0_6 = arith.constant 0 : index
    %7 = vector.load %arg5[%c0_5, %c0_6] : memref<32x128xbf16, #tpu.memory_space<vmem>>, vector<32x128xbf16>
    tpu.vector_store %arg5[%c0_5, %c0_6], %6 {strides = array<i32>} : memref<32x128xbf16, #tpu.memory_space<vmem>>, vector<32x128xbf16>,
    return
  }
  func.func @transform_0(%arg0: i32, %arg1: i32) -> (i32, i32) {
    %c0_i32 = arith.constant 0 : i32
    %c0_i32_0 = arith.constant 0 : i32
    return %arg0, %c0_i32 : i32, i32
  }
  func.func @transform_1(%arg0: i32, %arg1: i32) -> (i32, i32) {
    %c0_i32 = arith.constant 0 : i32
    %c0_i32_0 = arith.constant 0 : i32
    return %c0_i32, %arg1 : i32, i32
  }
  func.func @transform_2(%arg0: i32, %arg1: i32) -> (i32, i32) {
    %c0_i32 = arith.constant 0 : i32
    %c0_i32_0 = arith.constant 0 : i32
    return %c0_i32, %arg1 : i32, i32
  }
  func.func @transform_3(%arg0: i32, %arg1: i32) -> (i32, i32) {
    %c0_i32 = arith.constant 0 : i32
    return %arg0, %arg1 : i32, i32
  }
}

module attributes {stable_mosaic.version = 11 : i64} {
  func.func @_linear_kernel(%arg0: i32, %arg1: i32, %arg2: memref<32x128xbf16, #tpu.memory_space<vmem>>, %arg3: memref<128x128xbf16, #tpu.memory_space<vmem>>, %arg4: memref<1x128xf32, #tpu.memory_space<vmem>>, %arg5: memref<32x128xbf16, #tpu.memory_space<vmem>>) attributes {dimension_semantics = [#tpu.dimension_semantics<parallel>, #tpu.dimension_semantics<parallel>], iteration_bounds = array<i64: 1, 3>, scalar_prefetch = 0 : i64, scratch_operands = 0 : i64, tpu.core_type = #tpu.core_type<tc>, window_params = [{transform_indices = @transform_0, window_bounds = array<i64: 32, 128>}, {transform_indices = @transform_1, window_bounds = array<i64: 128, 128>}, {transform_indices = @transform_2, window_bounds = array<i64: 1, 128>}, {transform_indices = @transform_3, window_bounds = array<i64: 32, 128>}]} {
    %c0 = arith.constant 0 : index
    %c0_0 = arith.constant 0 : index
    %0 = vector.load %arg2[%c0, %c0_0] : memref<32x128xbf16, #tpu.memory_space<vmem>>, vector<32x128xbf16>
    %c0_1 = arith.constant 0 : index
    %c0_2 = arith.constant 0 : index
    %1 = vector.load %arg3[%c0_1, %c0_2] : memref<128x128xbf16, #tpu.memory_space<vmem>>, vector<128x128xbf16>
    %cst = arith.constant dense<0.000000e+00> : vector<32x128xf32>
    %2 = tpu.matmul %0, %1, %cst {dimension_numbers = #tpu.dot_dimension_numbers<[1], [0], [0], [1], [0, 0, 1, 1], [], []>} : vector<32x128xbf16>, vector<128x128xbf16>, vector<32x128xf32> -> vector<32x128xf32>
    %c0_3 = arith.constant 0 : index
    %c0_4 = arith.constant 0 : index
    %3 = vector.load %arg4[%c0_3, %c0_4] : memref<1x128xf32, #tpu.memory_space<vmem>>, vector<1x128xf32>
    %4 = vector.broadcast %3 : vector<1x128xf32> to vector<32x128xf32>
    %5 = arith.addf %2, %4 : vector<32x128xf32>
    %6 = arith.truncf %5 : vector<32x128xf32> to vector<32x128xbf16>
    %c0_5 = arith.constant 0 : index
    %c0_6 = arith.constant 0 : index
    %7 = vector.load %arg5[%c0_5, %c0_6] : memref<32x128xbf16, #tpu.memory_space<vmem>>, vector<32x128xbf16>
    tpu.vector_store %arg5[%c0_5, %c0_6], %6 {strides = array<i32>} : memref<32x128xbf16, #tpu.memory_space<vmem>>, vector<32x128xbf16>,
    return
  }
  func.func @transform_0(%arg0: i32, %arg1: i32) -> (i32, i32) {
    %c0_i32 = arith.constant 0 : i32
    %c0_i32_0 = arith.constant 0 : i32
    return %arg0, %c0_i32 : i32, i32
  }
  func.func @transform_1(%arg0: i32, %arg1: i32) -> (i32, i32) {
    %c0_i32 = arith.constant 0 : i32
    %c0_i32_0 = arith.constant 0 : i32
    return %c0_i32, %arg1 : i32, i32
  }
  func.func @transform_2(%arg0: i32, %arg1: i32) -> (i32, i32) {
    %c0_i32 = arith.constant 0 : i32
    %c0_i32_0 = arith.constant 0 : i32
    return %c0_i32, %arg1 : i32, i32
  }
  func.func @transform_3(%arg0: i32, %arg1: i32) -> (i32, i32) {
    %c0_i32 = arith.constant 0 : i32
    return %arg0, %arg1 : i32, i32
  }
}

</mosaic_0001>

<bundles_post_ra>
// kernel: distilbert_class_forward.16
= control target key start
LH: loop header
LB: loop body
LE: loop exit
PB: predicated region body
PF: predicated region fallthrough
CT: control target
= control target key end

     0   :  { %s770_s12 = smov 0   ;;  %s772_s13 = smov 0   ;;  %s878_s0 = inlined_call_operand.vmem [shape: bf16[32,128], index: 0, kind: input, shape index: {}]   ;;  %s879_s1 = inlined_call_operand.vmem [shape: bf16[128,384], index: 1, kind: input, shape index: {}]   ;;  %s880_s2 = inlined_call_operand.vmem [shape: f32[1,384], index: 2, kind: input, shape index: {}]   ;;  %s881_s3 = inlined_call_operand.vmem [shape: bf16[32,384], index: 3, kind: output, shape index: {}]  }
   0x1   :  { %s774_s14 = smov 0   ;;  %s776_s15 = smov 0  }
   0x2   :  { %s778_s16 = smov 0  }
   0x3 LB: > { %s22_s17 = sadd.s32 1, %s744_s15  ;;  %s586_s18 = sadd.s32 4294967295, %s748_s16   ;;  %s748_s16 = sphi %s778_s16, %s13_s16   ;;  %s744_s15 = sphi %s776_s15, %s886_s15   ;;  %s740_s14 = sphi %s774_s14, %s885_s14   ;;  %s736_s13 = sphi %s772_s13, %s884_s13   ;;  %s732_s12 = sphi %s770_s12, %s883_s12  }
   0x4   : > { %p23_p0 = scmp.ge.s32.totalorder %s22_s17, 3  ;;  %p65_p1 = scmp.ne.s32.totalorder %s736_s13, %s732_s12 }
   0x5   : > { %p66_p2 = scmp.eq.s32.totalorder %s748_s16, 0  ;;  %p123_p4 = scmp.eq.s32.totalorder %s586_s18, 2 }
   0x6   : > { %s888_s17 = smov (%p23_p0, %s22_s17), 0  ;;  %s58_s20 = sadd.s32 1, %s736_s13 }
   0x7   : > { %p67_p3 = por %p66_p2, %p65_p1  ;;  %s55_s19 = ssub.s32 %s744_s15, %s888_s17 }
   0x8   : > { %p56_p5 = scmp.eq.s32.totalorder %s55_s19, 0  ;;  %p805_p6 = por %p123_p4, %p65_p1 }
   0x9   : > { %p590_p7 = scmp.ge.s32.totalorder %s748_s16, 3 }
   0xa   : > { %s810_s22 = scalar_select %p56_p5, %s736_s13, %s58_s20  }
   0xb   : > { %154 = sbr.rel (%p590_p7) target bundleno = 36 (0x24), region = 20 }
  0x10   : > { %157 = sbr.rel (!%p67_p3) target bundleno = 36 (0x24), region = 24  ;;  %s159_s23 = sand.u32 (%p67_p3), 1, %s736_s13  }
  0x11   : > { %s592_s24 = sshll.u32 (%p67_p3), %s744_s15, 2  ;;  %s591_s25 = sshll.u32 (%p67_p3), %s159_s23, 6 }
  0x12   : > { %s818_s28 = scalar_lea.vmem (%p67_p3), %s879_s1, %s592_s24  ;;  %s161_s29 = scalar_lea.vmem (%p67_p3), [#allocation2], %s591_s25 }
  0x13   : > { %v180_v0 = vld [vmem:[%s818_s28] sm:$0xf] (%p67_p3)  ;;  %v182_v1 = vld [vmem:[%s818_s28 + $0xc] sm:$0xf] (%p67_p3)  ;;  %v184_v2 = vld [vmem:[%s818_s28 + $0x18] sm:$0xf] (%p67_p3) }
  0x14   : > { %181 = vst [vmem:[%s161_s29] sm:$0xf] (%p67_p3), %v180_v0  ;;  %v186_v3 = vld [vmem:[%s818_s28 + $0x24] sm:$0xf] (%p67_p3)  ;;  %v188_v4 = vld [vmem:[%s818_s28 + $0x30] sm:$0xf] (%p67_p3) }
  0x15   : > { %183 = vst [vmem:[%s161_s29 + $0x4] sm:$0xf] %v182_v1  ;;  %v190_v5 = vld [vmem:[%s818_s28 + $0x3c] sm:$0xf]  ;;  %v192_v6 = vld [vmem:[%s818_s28 + $0x48] sm:$0xf] }
  0x16   : > { %185 = vst [vmem:[%s161_s29 + $0x8] sm:$0xf] %v184_v2  ;;  %v194_v7 = vld [vmem:[%s818_s28 + $0x54] sm:$0xf]  ;;  %v196_v8 = vld [vmem:[%s818_s28 + $0x60] sm:$0xf] }
  0x17   : > { %187 = vst [vmem:[%s161_s29 + $0xc] sm:$0xf] %v186_v3  ;;  %v198_v9 = vld [vmem:[%s818_s28 + $0x6c] sm:$0xf]  ;;  %v200_v10 = vld [vmem:[%s818_s28 + $0x78] sm:$0xf] }
  0x18   : > { %189 = vst [vmem:[%s161_s29 + $0x10] sm:$0xf] %v188_v4  ;;  %v202_v11 = vld [vmem:[%s818_s28 + $0x84] sm:$0xf]  ;;  %v204_v12 = vld [vmem:[%s818_s28 + $0x90] sm:$0xf] }
  0x19   : > { %191 = vst [vmem:[%s161_s29 + $0x14] sm:$0xf] %v190_v5  ;;  %v206_v13 = vld [vmem:[%s818_s28 + $0x9c] sm:$0xf]  ;;  %v208_v14 = vld [vmem:[%s818_s28 + $0xa8] sm:$0xf] }
  0x1a   : > { %193 = vst [vmem:[%s161_s29 + $0x18] sm:$0xf] %v192_v6  ;;  %v210_v15 = vld [vmem:[%s818_s28 + $0xb4] sm:$0xf] }
  0x1b   : > { %195 = vst [vmem:[%s161_s29 + $0x1c] sm:$0xf] %v194_v7 }
  0x1c   : > { %197 = vst [vmem:[%s161_s29 + $0x20] sm:$0xf] %v196_v8 }
  0x1d   : > { %199 = vst [vmem:[%s161_s29 + $0x24] sm:$0xf] %v198_v9 }
  0x1e   : > { %201 = vst [vmem:[%s161_s29 + $0x28] sm:$0xf] %v200_v10 }
  0x1f   : > { %203 = vst [vmem:[%s161_s29 + $0x2c] sm:$0xf] %v202_v11 }
  0x20   : > { %205 = vst [vmem:[%s161_s29 + $0x30] sm:$0xf] %v204_v12 }
  0x21   : > { %207 = vst [vmem:[%s161_s29 + $0x34] sm:$0xf] %v206_v13 }
  0x22   : > { %209 = vst [vmem:[%s161_s29 + $0x38] sm:$0xf] %v208_v14 }
  0x23   : > { %211 = vst [vmem:[%s161_s29 + $0x3c] sm:$0xf] %v210_v15 }
  0x24 PF: > { %p593_p8 = scmp.ge.s32.totalorder %s748_s16, 1  ;;  %p272_p9 = scmp.lt.s32.totalorder %s748_s16, 4 }
  0x26   : > { %p273_p10 = pnand %p593_p8, %p272_p9 }
  0x27   : > { %s279_s30 = sand.u32 (!%p273_p10), 1, %s732_s12   ;;  %p315_p11 = scmp.lt.s32.totalorder (!%p273_p10), %s740_s14, 2 }
  0x28   : > { %276 = sbr.rel (%p273_p10) target bundleno = 227 (0xe3), region = 69  ;;  %s594_s4 = sshll.u32 (!%p273_p10), %s279_s30, 6 }
  0x29   : > { %s281_s5 = scalar_lea.vmem (!%p273_p10), [#allocation2], %s594_s4  ;;  %s595_s20 = sshll.u32 (!%p273_p10), %s279_s30, 4 }
  0x2a   : > { %s308_s23 = scalar_lea.vmem (!%p273_p10), [#allocation3], %s595_s20 }
  0x2d   : > { %v649_v16 = vld [vmem:[%s281_s5 + $0x38] sm:$0xff]  ;;  %s843_s6 = scalar_select %p315_p11, %s740_s14, 2  ;;  %v648_v17 = vld [vmem:[%s281_s5 + $0x30] sm:$0xff]  ;;  %v647_v18 = vld [vmem:[%s281_s5 + $0x28] sm:$0xff] }
  0x2e   : > { %403 = vmatpush.bf16.msra.mxu0 %v649_v16  ;;  %661 = vmatpush.bf16.msra.mxu1 %v649_v16  ;;  %v646_v19 = vld [vmem:[%s281_s5 + $0x20] sm:$0xff]  ;;  %v645_v20 = vld [vmem:[%s281_s5 + $0x18] sm:$0xff]  ;;  %v644_v21 = vld [vmem:[%s281_s5 + $0x10] sm:$0xff]  ;;  %s637_s24 = sshll.u32 (%p805_p6), %s740_s14, 2 }
  0x2f   : > { %s317_s9 = scalar_lea.vmem %s880_s2, %s843_s6  ;;  %v643_v22 = vld [vmem:[%s281_s5 + $0x8] sm:$0xff]  ;;  %v642_v23 = vld [vmem:[%s281_s5] sm:$0xff]  ;;  %s441_s26 = scalar_lea.vmem (%p805_p6), %s881_s3, %s637_s24 }
  0x30   : > { %v640_v24 = vld [vmem:[%s878_s0] sm:$0xff]  ;;  %v641_v25 = vld [vmem:[%s878_s0 + $0x8] sm:$0xff] }
  0x31   : > { %v709_v28 = vld [vmem:[%s317_s9] ss:$0 sm:$0xff] }
  0x32   : > { %404 = vmatpush.bf16.msra.mxu0 %v648_v17  ;;  %662 = vmatpush.bf16.msra.mxu1 %v648_v17 }
  0x36   : > { %405 = vmatpush.bf16.msra.mxu0 %v647_v18  ;;  %663 = vmatpush.bf16.msra.mxu1 %v647_v18 }
  0x3a   : > { %406 = vmatpush.bf16.msra.mxu0 %v646_v19  ;;  %664 = vmatpush.bf16.msra.mxu1 %v646_v19 }
  0x3e   : > { %407 = vmatpush.bf16.msra.mxu0 %v645_v20  ;;  %665 = vmatpush.bf16.msra.mxu1 %v645_v20 }
  0x42   : > { %408 = vmatpush.bf16.msra.mxu0 %v644_v21  ;;  %666 = vmatpush.bf16.msra.mxu1 %v644_v21 }
  0x46   : > { %409 = vmatpush.bf16.msra.mxu0 %v643_v22  ;;  %667 = vmatpush.bf16.msra.mxu1 %v643_v22 }
  0x4a   : > { %410 = vmatpush.bf16.msra.mxu0 %v642_v23  ;;  %668 = vmatpush.bf16.msra.mxu1 %v642_v23 }
  0x4d   : > { %411 = vmatmul.bf16.vlgmr.msra.gmra.mxu0 %v640_v24  ;;  %416 = vmatmul.bf16.vlgmr.msra.gmra.mxu1 %v641_v25 }
  0xca   : > { %v412_v26 = vpop.f32.mrf.mxu0  ;;  %v417_v27 = vpop.f32.mrf.mxu1 }
  0xcb   : > { %v413_v31 = vadd.f32 %v709_v28, %v412_v26  ;;  %v418_v32 = vadd.f32 %v709_v28, %v417_v27 }
  0xd2   : > { %v414_v29 = vpop.f32.mrf.mxu0  ;;  %v419_v30 = vpop.f32.mrf.mxu1 }
  0xd3   : > { %v415_v33 = vadd.f32 %v709_v28, %v414_v29  ;;  %v420_v34 = vadd.f32 %v709_v28, %v419_v30 }
  0xd4   : > { %436 = sbr.rel (!%p805_p6) target bundleno = 227 (0xe3), region = 77 }
  0xd5   : > { %v653_v35 = vpack.c.bf16 %v415_v33, %v413_v31  ;;  %v658_v36 = vpack.c.bf16 %v420_v34, %v418_v32 }
  0xd7   : > { %654 = vst [vmem:[%s308_s23] sm:$0xff] %v653_v35  }
  0xd8   : > { %660 = vst [vmem:[%s308_s23 + $0x8] sm:$0xff] %v658_v36  }
  0xde   : > { %v458_v37 = vld [vmem:[%s308_s23] sm:$0xf]  ;;  %v460_v38 = vld [vmem:[%s308_s23 + $0x4] sm:$0xf] }
  0xdf   : > { %v462_v39 = vld [vmem:[%s308_s23 + $0x8] sm:$0xf]  ;;  %459 = vst [vmem:[%s441_s26] sm:$0xf] %v458_v37  ;;  %v464_v40 = vld [vmem:[%s308_s23 + $0xc] sm:$0xf] }
  0xe0   : > { %461 = vst [vmem:[%s441_s26 + $0xc] sm:$0xf] %v460_v38 }
  0xe1   : > { %463 = vst [vmem:[%s441_s26 + $0x18] sm:$0xf] %v462_v39 }
  0xe2   : > { %465 = vst [vmem:[%s441_s26 + $0x24] sm:$0xf] %v464_v40 }
  0xe3 PF: > { %s13_s16 = sadd.s32 1, %s748_s16   ;;  %s883_s12 = smov %s736_s13 }
  0xe4   : > { %p10_p12 = scmp.ge.s32.totalorder %s13_s16, 5   ;;  %s884_s13 = smov %s810_s22 }
  0xe5   : > { %s885_s14 = smov %s744_s15  ;;  %s886_s15 = smov %s888_s17 }
  0xe6   :  { %12 = sbr.rel (!%p10_p12) target bundleno = 3 (0x3), region = 155 }

// kernel: distilbert_class_forward.15
= control target key start
LH: loop header
LB: loop body
LE: loop exit
PB: predicated region body
PF: predicated region fallthrough
CT: control target
= control target key end

     0   :  { %v194_v16 = vmov 128.0   ;;  %s264_s0 = inlined_call_operand.vmem [shape: bf16[32,128], index: 0, kind: input, shape index: {}]   ;;  %s265_s1 = inlined_call_operand.vmem [shape: bf16[32,128], index: 1, kind: input, shape index: {}]   ;;  %s266_s2 = inlined_call_operand.vmem [shape: f32[1,128], index: 2, kind: input, shape index: {}]   ;;  %s267_s3 = inlined_call_operand.vmem [shape: f32[1,128], index: 3, kind: input, shape index: {}]   ;;  %s268_s4 = inlined_call_operand.vmem [shape: bf16[32,128], index: 4, kind: output, shape index: {}]  }
   0x1   :  { %v178_v0 = vld [vmem:[%s264_s0 + $0x8] sm:$0xff]   ;;  %v153_v2 = vld [vmem:[%s264_s0] sm:$0xff]   ;;  %184 = vrcp.f32 %v194_v16 }
   0x2   :  { %v179_v1 = vld [vmem:[%s265_s1 + $0x8] sm:$0xff]   ;;  %v158_v3 = vunpack.c.l.bf16 %v178_v0  ;;  %v154_v5 = vunpack.c.l.bf16 %v153_v2  ;;  %v161_v6 = vld [vmem:[%s265_s1] sm:$0xff]   ;;  %v159_v10 = vunpack.c.h.bf16 %v178_v0  ;;  %v155_v12 = vunpack.c.h.bf16 %v153_v2 }
   0x3   :  { %v166_v4 = vunpack.c.l.bf16 %v179_v1  ;;  %v162_v7 = vunpack.c.l.bf16 %v161_v6  ;;  %v167_v11 = vunpack.c.h.bf16 %v179_v1  ;;  %v163_v13 = vunpack.c.h.bf16 %v161_v6 }
   0x5   :  { %v35_v8 = vadd.f32 %v166_v4, %v158_v3  ;;  %v33_v9 = vadd.f32 %v162_v7, %v154_v5  ;;  %v36_v14 = vadd.f32 %v167_v11, %v159_v10  ;;  %v34_v15 = vadd.f32 %v163_v13, %v155_v12  ;;  %v182_v10 = vld [vmem:[%s266_s2] ss:$0 sm:$0xff] }
   0x7   :  { %41 = vadd.xlane.f32.xlu1 %v35_v8  ;;  %37 = vadd.xlane.f32.xlu0 %v33_v9  ;;  %v185_v17 = vpop.eup %184 }
   0x8   :  { %v46_v18 = vmul.f32 128.0, %v185_v17  ;;  %vm50_vm0 = vweird.f32 %v185_v17 }
   0xa   :  { %v47_v19 = vsub.f32 1.0, %v46_v18 }
   0xc   :  { %v48_v20 = vmul.f32 %v185_v17, %v47_v19 }
   0xe   :  { %v49_v21 = vadd.f32 %v185_v17, %v48_v20 }
   0xf   :  { %43 = vadd.xlane.f32.xlu1 %v36_v14  ;;  %39 = vadd.xlane.f32.xlu0 %v34_v15 }
  0x10   :  { %v51_v22 = vsel %vm50_vm0, %v185_v17, %v49_v21  ;;  %v183_v17 = vld [vmem:[%s267_s3] ss:$0 sm:$0xff] }
  0x7a   :  { %v42_v23 = vpop.xlane.xlu1 %41  ;;  %v38_v25 = vpop.xlane.xlu0 %37 }
  0x7b   :  { %v54_v24 = vmul.f32 %v51_v22, %v42_v23  ;;  %v52_v26 = vmul.f32 %v51_v22, %v38_v25 }
  0x7d   :  { %v232_v27 = vsub.f32 %v35_v8, %v54_v24  ;;  %v234_v28 = vsub.f32 %v33_v9, %v52_v26 }
  0x7f   :  { %v62_v29 = vmul.f32 %v232_v27, %v232_v27  ;;  %v60_v30 = vmul.f32 %v234_v28, %v234_v28 }
  0x81   :  { %68 = vadd.xlane.f32.xlu0 %v62_v29  ;;  %64 = vadd.xlane.f32.xlu2 %v60_v30 }
  0x82   :  { %v44_v31 = vpop.xlane.xlu1 %43  ;;  %v40_v33 = vpop.xlane.xlu0 %39 }
  0x83   :  { %v55_v32 = vmul.f32 %v51_v22, %v44_v31  ;;  %v53_v34 = vmul.f32 %v51_v22, %v40_v33 }
  0x85   :  { %v240_v35 = vsub.f32 %v36_v14, %v55_v32  ;;  %v242_v36 = vsub.f32 %v34_v15, %v53_v34 }
  0x87   :  { %v63_v37 = vmul.f32 %v240_v35, %v240_v35  ;;  %v61_v38 = vmul.f32 %v242_v36, %v242_v36 }
  0x89   :  { %70 = vadd.xlane.f32.xlu1 %v63_v37  ;;  %66 = vadd.xlane.f32.xlu2 %v61_v38 }
  0xf4   :  { %v69_v39 = vpop.xlane.xlu0 %68  ;;  %v65_v40 = vpop.xlane.xlu2 %64 }
  0xf5   :  { %v74_v41 = vmul.f32 %v69_v39, %v51_v22  ;;  %v72_v42 = vmul.f32 %v65_v40, %v51_v22 }
  0xf7   :  { %v78_v43 = vadd.f32 1e-12, %v74_v41  ;;  %v76_v44 = vadd.f32 1e-12, %v72_v42 }
  0xf9   :  { %186 = vrsqrt.f32 %v78_v43  ;;  %vm106_vm3 = vweird.f32 %v78_v43  ;;  %vm86_vm4 = vweird.f32 %v76_v44 }
  0xfa   :  { %188 = vrsqrt.f32 %v76_v44 }
  0xfc   :  { %v71_v45 = vpop.xlane.xlu1 %70  ;;  %v67_v47 = vpop.xlane.xlu2 %66 }
  0xfd   :  { %v75_v46 = vmul.f32 %v71_v45, %v51_v22  ;;  %v73_v48 = vmul.f32 %v67_v47, %v51_v22 }
  0xff   :  { %v187_v49 = vpop.eup %186  ;;  %v79_v50 = vadd.f32 1e-12, %v75_v46  ;;  %v77_v53 = vadd.f32 1e-12, %v73_v48 }
 0x100   :  { %v189_v51 = vpop.eup %188  ;;  %v101_v52 = vmul.f32 %v187_v49, %v78_v43  ;;  %vm107_vm1 = vweird.f32 %v187_v49 }
 0x101   :  { %v81_v54 = vmul.f32 %v189_v51, %v76_v44  ;;  %190 = vrsqrt.f32 %v79_v50  ;;  %vm87_vm2 = vweird.f32 %v189_v51  ;;  %vm108_vm5 = vmor %vm106_vm3, %vm107_vm1  ;;  %vm116_vm9 = vweird.f32 %v79_v50 }
 0x102   :  { %v102_v55 = vmul.f32 %v187_v49, %v101_v52  ;;  %192 = vrsqrt.f32 %v77_v53  ;;  %vm88_vm6 = vmor %vm86_vm4, %vm87_vm2  ;;  %vm96_vm11 = vweird.f32 %v77_v53 }
 0x103   :  { %v82_v56 = vmul.f32 %v189_v51, %v81_v54 }
 0x104   :  { %v103_v57 = vmul.f32 0.5, %v102_v55 }
 0x105   :  { %v83_v58 = vmul.f32 0.5, %v82_v56 }
 0x106   :  { %v104_v59 = vsub.f32 1.5, %v103_v57 }
 0x107   :  { %v191_v60 = vpop.eup %190  ;;  %v84_v61 = vsub.f32 1.5, %v83_v58 }
 0x108   :  { %v193_v62 = vpop.eup %192  ;;  %v105_v63 = vmul.f32 %v187_v49, %v104_v59  ;;  %v111_v0 = vmul.f32 %v191_v60, %v79_v50  ;;  %vm117_vm7 = vweird.f32 %v191_v60 }
 0x109   :  { %v85_v1 = vmul.f32 %v189_v51, %v84_v61  ;;  %v91_v2 = vmul.f32 %v193_v62, %v77_v53  ;;  %vm97_vm8 = vweird.f32 %v193_v62  ;;  %vm118_vm10 = vmor %vm116_vm9, %vm117_vm7 }
 0x10a   :  { %v112_v3 = vmul.f32 %v191_v60, %v111_v0  ;;  %v109_v5 = vsel %vm108_vm5, %v187_v49, %v105_v63  ;;  %vm98_vm12 = vmor %vm96_vm11, %vm97_vm8 }
 0x10b   :  { %v92_v4 = vmul.f32 %v193_v62, %v91_v2  ;;  %v89_v7 = vsel %vm88_vm6, %v189_v51, %v85_v1  ;;  %v122_v11 = vmul.f32 %v109_v5, %v232_v27 }
 0x10c   :  { %v113_v6 = vmul.f32 0.5, %v112_v3  ;;  %v120_v13 = vmul.f32 %v89_v7, %v234_v28 }
 0x10d   :  { %v93_v8 = vmul.f32 0.5, %v92_v4  ;;  %v130_v18 = vmul.f32 %v182_v10, %v122_v11 }
 0x10e   :  { %v114_v9 = vsub.f32 1.5, %v113_v6  ;;  %v128_v21 = vmul.f32 %v182_v10, %v120_v13 }
 0x10f   :  { %v94_v12 = vsub.f32 1.5, %v93_v8  ;;  %v138_v25 = vadd.f32 %v183_v17, %v130_v18 }
 0x110   :  { %v115_v14 = vmul.f32 %v191_v60, %v114_v9  ;;  %v136_v27 = vadd.f32 %v183_v17, %v128_v21 }
 0x111   :  { %v95_v15 = vmul.f32 %v193_v62, %v94_v12 }
 0x112   :  { %v119_v16 = vsel %vm118_vm10, %v191_v60, %v115_v14 }
 0x113   :  { %v123_v19 = vmul.f32 %v119_v16, %v240_v35  ;;  %v99_v20 = vsel %vm98_vm12, %v193_v62, %v95_v15 }
 0x114   :  { %v121_v22 = vmul.f32 %v99_v20, %v242_v36 }
 0x115   :  { %v131_v23 = vmul.f32 %v182_v10, %v123_v19 }
 0x116   :  { %v129_v24 = vmul.f32 %v182_v10, %v121_v22 }
 0x117   :  { %v139_v26 = vadd.f32 %v183_v17, %v131_v23 }
 0x118   :  { %v137_v28 = vadd.f32 %v183_v17, %v129_v24 }
 0x119   :  { %v176_v29 = vpack.c.bf16 %v139_v26, %v138_v25 }
 0x11a   :  { %v171_v30 = vpack.c.bf16 %v137_v28, %v136_v27 }
 0x11b   :  { %180 = vst [vmem:[%s268_s4 + $0x8] sm:$0xff] %v176_v29  }
 0x11c   :  { %172 = vst [vmem:[%s268_s4] sm:$0xff] %v171_v30  }

// kernel: distilbert_class_forward.18
= control target key start
LH: loop header
LB: loop body
LE: loop exit
PB: predicated region body
PF: predicated region fallthrough
CT: control target
= control target key end

     0   :  { %8 = vsyncpa [#allocation3], 0  ;;  %s245_s15 = smov [#allocation2]   ;;  %s246_s17 = smov 64   ;;  %s286_s0 = inlined_call_operand.vmem [shape: bf16[32,128], index: 0, kind: input, shape index: {}]   ;;  %s287_s1 = inlined_call_operand.hbm [shape: bf16[128,128], index: 1, kind: input, shape index: {}]   ;;  %s288_s2 = inlined_call_operand.vmem [shape: f32[1,128], index: 2, kind: input, shape index: {}]   ;;  %s289_s3 = inlined_call_operand.vmem [shape: bf16[32,128], index: 3, kind: output, shape index: {}]  }
   0x1   :  { %s15_s14 = sshll.u32 %s287_s1, 4  ;;  %s17_s16 = sshll.u32 %s245_s15, 4  ;;  %s16_s14 = int_to_ptr.hbm [resolvable:$true] %s15_s14  ;;  %s18_s16 = int_to_ptr.vmem [resolvable:$true] %s17_s16 }
   0x2   :  { %s247_s18 = smov 4  }
   0x3   :  { %23 = dma.hbm_to_vmem [thread:$0]  %s16_s14, 1024, %s18_s16, [#allocation3], %s246_s17, %s246_s17, %s247_s18  }
   0x4   :  { %243 = dma.done.wait [#allocation3], 1024  }
   0x5   :  { %244 = vsyncadd [#allocation3], 4294966272  ;;  %v195_v0 = vld [vmem:[#allocation2 + $0x38] sm:$0xff]  ;;  %v194_v1 = vld [vmem:[#allocation2 + $0x30] sm:$0xff] }
   0x6   :  { %114 = vmatpush.bf16.msra.mxu0 %v195_v0  ;;  %207 = vmatpush.bf16.msra.mxu1 %v195_v0  ;;  %v193_v2 = vld [vmem:[#allocation2 + $0x28] sm:$0xff]  ;;  %v192_v3 = vld [vmem:[#allocation2 + $0x20] sm:$0xff]  ;;  %v191_v4 = vld [vmem:[#allocation2 + $0x18] sm:$0xff] }
   0x7   :  { %v190_v5 = vld [vmem:[#allocation2 + $0x10] sm:$0xff]  ;;  %v189_v6 = vld [vmem:[#allocation2 + $0x8] sm:$0xff]  ;;  %v188_v7 = vld [vmem:[#allocation2] sm:$0xff] }
   0x8   :  { %v186_v8 = vld [vmem:[%s286_s0] sm:$0xff]  ;;  %v187_v9 = vld [vmem:[%s286_s0 + $0x8] sm:$0xff] }
   0x9   :  { %v218_v12 = vld [vmem:[%s288_s2] ss:$0 sm:$0xff] }
   0xa   :  { %115 = vmatpush.bf16.msra.mxu0 %v194_v1  ;;  %208 = vmatpush.bf16.msra.mxu1 %v194_v1 }
   0xe   :  { %116 = vmatpush.bf16.msra.mxu0 %v193_v2  ;;  %209 = vmatpush.bf16.msra.mxu1 %v193_v2 }
  0x12   :  { %117 = vmatpush.bf16.msra.mxu0 %v192_v3  ;;  %210 = vmatpush.bf16.msra.mxu1 %v192_v3 }
  0x16   :  { %118 = vmatpush.bf16.msra.mxu0 %v191_v4  ;;  %211 = vmatpush.bf16.msra.mxu1 %v191_v4 }
  0x1a   :  { %119 = vmatpush.bf16.msra.mxu0 %v190_v5  ;;  %212 = vmatpush.bf16.msra.mxu1 %v190_v5 }
  0x1e   :  { %120 = vmatpush.bf16.msra.mxu0 %v189_v6  ;;  %213 = vmatpush.bf16.msra.mxu1 %v189_v6 }
  0x22   :  { %121 = vmatpush.bf16.msra.mxu0 %v188_v7  ;;  %214 = vmatpush.bf16.msra.mxu1 %v188_v7 }
  0x25   :  { %122 = vmatmul.bf16.vlgmr.msra.gmra.mxu0 %v186_v8  ;;  %127 = vmatmul.bf16.vlgmr.msra.gmra.mxu1 %v187_v9 }
  0xa2   :  { %v123_v10 = vpop.f32.mrf.mxu0  ;;  %v128_v11 = vpop.f32.mrf.mxu1 }
  0xa3   :  { %v124_v15 = vadd.f32 %v218_v12, %v123_v10  ;;  %v129_v16 = vadd.f32 %v218_v12, %v128_v11 }
  0xaa   :  { %v125_v13 = vpop.f32.mrf.mxu0  ;;  %v130_v14 = vpop.f32.mrf.mxu1 }
  0xab   :  { %v126_v17 = vadd.f32 %v218_v12, %v125_v13  ;;  %v131_v18 = vadd.f32 %v218_v12, %v130_v14 }
  0xad   :  { %v199_v19 = vpack.c.bf16 %v126_v17, %v124_v15  ;;  %v204_v20 = vpack.c.bf16 %v131_v18, %v129_v16 }
  0xaf   :  { %200 = vst [vmem:[%s289_s3] sm:$0xff] %v199_v19  }
  0xb0   :  { %206 = vst [vmem:[%s289_s3 + $0x8] sm:$0xff] %v204_v20  }
  0xb1   :  { %145 = vsyncpa [#allocation3], 1 }

// kernel: distilbert_class_forward.17
= control target key start
LH: loop header
LB: loop body
LE: loop exit
PB: predicated region body
PF: predicated region fallthrough
CT: control target
= control target key end

     0   :  { %s924_s15 = smov 0   ;;  %s926_s16 = smov 0   ;;  %s1042_s0 = inlined_call_operand.vmem [shape: bf16[2,16,384], index: 0, kind: input, shape index: {}, may-alias: {0,1,2}]   ;;  %s1043_s1 = inlined_call_operand.vmem [shape: bf16[2,16,384], index: 1, kind: input, shape index: {}, may-alias: {0,1,2}]   ;;  %s1044_s2 = inlined_call_operand.vmem [shape: bf16[2,16,384], index: 2, kind: input, shape index: {}, may-alias: {0,1,2}]   ;;  %s1045_s3 = inlined_call_operand.vmem [shape: f32[2,1,16], index: 3, kind: input, shape index: {}]   ;;  %s1046_s4 = inlined_call_operand.vmem [shape: bf16[2,16,128], index: 4, kind: output, shape index: {}]  }
   0x1   :  { %s928_s17 = smov 0   ;;  %s930_s18 = smov 0  }
   0x2   :  { %s932_s19 = smov 0  }
   0x3 LB: > { %s26_s20 = sadd.s32 1, %s892_s18  ;;  %p42_p1 = scmp.ne.s32.totalorder %s884_s16, %s880_s15  ;;  %s896_s19 = sphi %s932_s19, %s14_s19   ;;  %s892_s18 = sphi %s930_s18, %s1051_s18   ;;  %s888_s17 = sphi %s928_s17, %s1050_s17   ;;  %s884_s16 = sphi %s926_s16, %s1049_s16   ;;  %s880_s15 = sphi %s924_s15, %s1048_s15  }
   0x4   : > { %p28_p0 = scmp.ge.s32.totalorder %s26_s20, 2  ;;  %p43_p2 = scmp.eq.s32.totalorder %s896_s19, 0 }
   0x5   : > { %s35_s23 = sadd.s32 1, %s884_s16  ;;  %p750_p5 = scmp.ge.s32.totalorder %s896_s19, 2 }
   0x6   : > { %s1053_s20 = smov (%p28_p0, %s26_s20), 0  ;;  %p955_p3 = por %p43_p2, %p42_p1 }
   0x7   : > { %s30_s22 = ssub.s32 %s892_s18, %s1053_s20  ;;  %182 = sbr.rel (%p750_p5) target bundleno = 33 (0x21), region = 16 }
   0x8   : > { %p33_p4 = scmp.eq.s32.totalorder %s30_s22, 0 }
   0xa   : > { %s963_s24 = scalar_select %p33_p4, %s884_s16, %s35_s23  }
   0xc   : > { %185 = sbr.rel (!%p955_p3) target bundleno = 19 (0x13), region = 20  ;;  %s187_s25 = sand.u32 (%p955_p3), 1, %s884_s16  }
   0xd   : > { %s794_s26 = smul.u32 (%p955_p3), 24, %s892_s18  ;;  %s751_s27 = sshll.u32 (%p955_p3), %s187_s25, 3 }
   0xe   : > { %s189_s5 = scalar_lea.vmem (%p955_p3), [#allocation2], %s751_s27 }
   0xf   : > { %s193_s30 = scalar_lea.vmem (%p955_p3), %s1042_s0, %s794_s26 }
  0x10   : > { %v210_v0 = vld [vmem:[%s193_s30] sm:$0xf] (%p955_p3)  ;;  %v212_v1 = vld [vmem:[%s193_s30 + $0xc] sm:$0xf] (%p955_p3) }
  0x11   : > { %211 = vst [vmem:[%s189_s5] sm:$0xf] %v210_v0 }
  0x12   : > { %213 = vst [vmem:[%s189_s5 + $0x4] sm:$0xf] %v212_v1 }
  0x13 PF: > { %241 = sbr.rel (!%p955_p3) target bundleno = 26 (0x1a), region = 61  ;;  %s243_s6 = sand.u32 (%p955_p3), 1, %s884_s16  }
  0x14   : > { %s754_s7 = smul.u32 (%p955_p3), 24, %s892_s18  ;;  %s753_s8 = sshll.u32 (%p955_p3), %s243_s6, 3 }
  0x15   : > { %s245_s12 = scalar_lea.vmem (%p955_p3), [#allocation3], %s753_s8 }
  0x16   : > { %s649_s11 = scalar_lea.vmem (%p955_p3), %s1043_s1, %s754_s7 }
  0x17   : > { %v755_v2 = vld [vmem:[%s649_s11 + $0x4] sm:$0xf] (%p955_p3)  ;;  %v756_v3 = vld [vmem:[%s649_s11 + $0x10] sm:$0xf] (%p955_p3) }
  0x18   : > { %268 = vst [vmem:[%s245_s12] sm:$0xf] %v755_v2 }
  0x19   : > { %270 = vst [vmem:[%s245_s12 + $0x4] sm:$0xf] %v756_v3 }
  0x1a PF: > { %298 = sbr.rel (!%p955_p3) target bundleno = 33 (0x21), region = 102  ;;  %s300_s13 = sand.u32 (%p955_p3), 1, %s884_s16  }
  0x1b   : > { %s758_s14 = smul.u32 (%p955_p3), 24, %s892_s18  ;;  %s757_s22 = sshll.u32 (%p955_p3), %s300_s13, 3 }
  0x1c   : > { %s302_s27 = scalar_lea.vmem (%p955_p3), [#allocation4], %s757_s22 }
  0x1d   : > { %s656_s26 = scalar_lea.vmem (%p955_p3), %s1044_s2, %s758_s14 }
  0x1e   : > { %v759_v4 = vld [vmem:[%s656_s26 + $0x8] sm:$0xf] (%p955_p3)  ;;  %v760_v5 = vld [vmem:[%s656_s26 + $0x14] sm:$0xf] (%p955_p3) }
  0x1f   : > { %325 = vst [vmem:[%s302_s27] sm:$0xf] %v759_v4 }
  0x20   : > { %327 = vst [vmem:[%s302_s27 + $0x4] sm:$0xf] %v760_v5 }
  0x21 PF: > { %p761_p6 = scmp.ge.s32.totalorder %s896_s19, 1  ;;  %p360_p7 = scmp.lt.s32.totalorder %s896_s19, 3 }
  0x23   : > { %p361_p8 = pnand %p761_p6, %p360_p7 }
  0x24   : > { %s367_s21 = sand.u32 (!%p361_p8), 1, %s880_s15   ;;  %s898_s30 = smov (!%p361_p8), 64  }
  0x25   : > { %364 = sbr.rel (%p361_p8) target bundleno = 829 (0x33d), region = 147  ;;  %s990_s28 = sshll.u32 (!%p361_p8), %s367_s21, 3 }
  0x26   : > { %s376_s29 = scalar_lea.vmem (!%p361_p8), [#allocation3], %s990_s28  ;;  %s369_s5 = scalar_lea.vmem (!%p361_p8), [#allocation2], %s990_s28 }
  0x27   : > { %p422_p9 = scmp.lt.s32.totalorder (!%p361_p8), %s888_s17, 1  ;;  %s383_s8 = scalar_lea.vmem (!%p361_p8), [#allocation4], %s990_s28 }
  0x2a   : > { %v787_v6 = vld [vmem:[%s376_s29] sm:$0xff]  ;;  %v786_v7 = vld [vmem:[%s369_s5] sm:$0xff]  ;;  %vm451_vm0 = vcmask 523264   ;;  %s1055_s17 = smov (!%p422_p9, %s888_s17), 1  ;;  %vm479_vm1 = vcmask 130048  }
  0x2b   : > { %528 = vrot.lane.b32.xlu0 %v787_v6, %s898_s30  ;;  %v456_v8 = vsel %vm451_vm0, %v787_v6, 0  ;;  %s424_s7 = scalar_lea.vmem %s1045_s3, %s1055_s17  ;;  %v788_v32 = vld [vmem:[%s383_s8] sm:$0xff]  ;;  %s785_s9 = sshll.u32 %s1055_s17, 3 }
  0x2c   : > { %465 = vmatpush.bf16.xpose.msra.mxu0 %v456_v8  ;;  %v841_v14 = vld [vmem:[%s424_s7] ss:$0 sm:$0xff]  ;;  %519 = vmatpush.bf16.msra.mxu1 %v788_v32  ;;  %s432_s12 = scalar_lea.vmem %s1046_s4, %s785_s9 }
  0x33   : > { %526 = vrot.lane.b32.xlu0 %v786_v7, %s898_s30  ;;  %775 = vmatmul.msk.bf16.vlgmr.msra.gmra.mxu0 %vm451_vm0, %v786_v7 }
  0x9d   : > { %v529_v9 = vpop.permute.xlu0 %528 }
  0x9e   : > { %v534_v10 = vsel %vm451_vm0, %v529_v9, 0 }
  0x9f   : > { %543 = vmatpush.bf16.xpose.msra.mxu2 %v534_v10 }
  0xa5   : > { %v527_v11 = vpop.permute.xlu0 %526 }
  0xa6   : > { %781 = vmatmul.msk.bf16.vlgmr.msra.gmra.mxu2 %vm451_vm0, %v527_v11 }
  0xb0   : > { %v467_v12 = vpop.f32.mrf.mxu0 }
  0xb1   : > { %v472_v13 = vmul.f32 0.125, %v467_v12 }
  0xb3   : > { %v477_v15 = vadd.f32 %v841_v14, %v472_v13 }
  0xb5   : > { %v480_v16 = vsel %vm479_vm1, %v477_v15, -inf }
  0xb6   : > { %481 = vmax.xlane.f32.xlu2 %v480_v16 }
  0xb8   : > { %v469_v17 = vpop.f32.mrf.mxu0 }
  0xb9   : > { %v473_v18 = vmul.f32 0.125, %v469_v17 }
  0xbb   : > { %v478_v19 = vadd.f32 %v841_v14, %v473_v18 }
  0xbd   : > { %v483_v20 = vsel %vm479_vm1, %v478_v19, -inf }
  0xbe   : > { %484 = vmax.xlane.f32.xlu2 %v483_v20 }
  0xd6   : > { %577 = vrot.lane.b32.xlu2 %v788_v32, %s898_s30 }
 0x129   : > { %v545_v21 = vpop.f32.mrf.mxu2  ;;  %v482_v33 = vpop.xlane.xlu2 %481 }
 0x12a   : > { %v550_v22 = vmul.f32 0.125, %v545_v21  ;;  %v486_v37 = vsub.f32 %v477_v15, %v482_v33 }
 0x12c   : > { %v552_v23 = vadd.f32 %v841_v14, %v550_v22  ;;  %v488_v40 = vmul.f32 1.442695, %v486_v37 }
 0x12e   : > { %v554_v24 = vsel %vm479_vm1, %v552_v23, -inf }
 0x12f   : > { %555 = vmax.xlane.f32.xlu1 %v554_v24 }
 0x131   : > { %v547_v25 = vpop.f32.mrf.mxu2  ;;  %v485_v41 = vpop.xlane.xlu2 %484 }
 0x132   : > { %v551_v26 = vmul.f32 0.125, %v547_v25  ;;  %v487_v43 = vsub.f32 %v478_v19, %v485_v41 }
 0x134   : > { %v553_v27 = vadd.f32 %v841_v14, %v551_v26  ;;  %v490_v45 = vmul.f32 1.442695, %v487_v43 }
 0x136   : > { %v557_v28 = vsel %vm479_vm1, %v553_v27, -inf }
 0x137   : > { %558 = vmax.xlane.f32.xlu1 %v557_v28 }
 0x139   : > { %v578_v50 = vpop.permute.xlu2 %577 }
 0x13a   : > { %590 = vmatpush.bf16.msra.mxu3 %v578_v50 }
 0x1a2   : > { %v556_v29 = vpop.xlane.xlu1 %555 }
 0x1a3   : > { %v560_v30 = vsub.f32 %v552_v23, %v556_v29 }
 0x1a5   : > { %v562_v31 = vmul.f32 1.442695, %v560_v30 }
 0x1a7   : > { %842 = vpow2.f32 %v562_v31 }
 0x1aa   : > { %v559_v34 = vpop.xlane.xlu1 %558 }
 0x1ab   : > { %v561_v35 = vsub.f32 %v553_v27, %v559_v34 }
 0x1ad   : > { %v843_v36 = vpop.eup %842  ;;  %v564_v38 = vmul.f32 1.442695, %v561_v35 }
 0x1ae   : > { %v566_v39 = vsel %vm479_vm1, %v843_v36, 0.0 }
 0x1af   : > { %844 = vpow2.f32 %v564_v38  ;;  %567 = vadd.xlane.f32.xlu0 %v566_v39 }
 0x1b0   : > { %846 = vpow2.f32 %v488_v40 }
 0x1b1   : > { %848 = vpow2.f32 %v490_v45 }
 0x1b5   : > { %v845_v42 = vpop.eup %844 }
 0x1b6   : > { %v569_v44 = vsel %vm479_vm1, %v845_v42, 0.0  ;;  %v847_v46 = vpop.eup %846 }
 0x1b7   : > { %570 = vadd.xlane.f32.xlu1 %v569_v44  ;;  %v492_v47 = vsel %vm479_vm1, %v847_v46, 0.0  ;;  %v849_v48 = vpop.eup %848 }
 0x1b8   : > { %v495_v49 = vsel %vm479_vm1, %v849_v48, 0.0 }
 0x1bf   : > { %493 = vadd.xlane.f32.xlu1 %v492_v47 }
 0x1c7   : > { %496 = vadd.xlane.f32.xlu1 %v495_v49 }
 0x222   : > { %v568_v51 = vpop.xlane.xlu0 %567 }
 0x223   : > { %850 = vrcp.f32 %v568_v51 }
 0x229   : > { %v851_v53 = vpop.eup %850 }
 0x22a   : > { %v571_v52 = vpop.xlane.xlu1 %570  ;;  %v574_v56 = vmul.f32 %v851_v53, %v843_v36 }
 0x22b   : > { %852 = vrcp.f32 %v571_v52 }
 0x231   : > { %v853_v54 = vpop.eup %852 }
 0x232   : > { %v494_v55 = vpop.xlane.xlu1 %493  ;;  %v575_v57 = vmul.f32 %v853_v54, %v845_v42 }
 0x233   : > { %854 = vrcp.f32 %v494_v55 }
 0x234   : > { %v576_v58 = vpack.c.bf16 %v575_v57, %v574_v56 }
 0x236   : > { %782 = vmatmul.msk.bf16.vlgmr.msra.gmra.mxu3 %vm479_vm1, %v576_v58 }
 0x239   : > { %v855_v60 = vpop.eup %854 }
 0x23a   : > { %v497_v59 = vpop.xlane.xlu1 %496  ;;  %v500_v62 = vmul.f32 %v855_v60, %v847_v46 }
 0x23b   : > { %856 = vrcp.f32 %v497_v59 }
 0x241   : > { %v857_v61 = vpop.eup %856 }
 0x242   : > { %v501_v63 = vmul.f32 %v857_v61, %v849_v48 }
 0x244   : > { %v502_v0 = vpack.c.bf16 %v501_v63, %v500_v62 }
 0x246   : > { %780 = vmatmul.msk.bf16.vlgmr.msra.gmra.mxu1 %vm479_vm1, %v502_v0 }
 0x2b9   : > { %v592_v1 = vpop.f32.mrf.mxu3 }
 0x2c1   : > { %v594_v2 = vpop.f32.mrf.mxu3 }
 0x2c2   : > { %v836_v3 = vpack.i.bf16 %v594_v2, %v592_v1 }
 0x2c3   : > { %v521_v4 = vpop.f32.mrf.mxu1 }
 0x2c4   : > { %837 = vrot.lane.b32.xlu1 %v836_v3, %s898_s30 }
 0x2cb   : > { %v523_v8 = vpop.f32.mrf.mxu1 }
 0x336   : > { %v838_v5 = vpop.permute.xlu1 %837 }
 0x337   : > { %v840_v6 = vunpack.i.h.bf16 %v838_v5  ;;  %v839_v7 = vunpack.i.l.bf16 %v838_v5 }
 0x339   : > { %v606_v9 = vsel %vm451_vm0, %v523_v8, %v840_v6  ;;  %v605_v10 = vsel %vm451_vm0, %v521_v4, %v839_v7 }
 0x33a   : > { %v792_v11 = vpack.c.bf16 %v606_v9, %v605_v10 }
 0x33c   : > { %793 = vst [vmem:[%s432_s12] sm:$0xff] %v792_v11  }
 0x33d PF: > { %s14_s19 = sadd.s32 1, %s896_s19   ;;  %s1048_s15 = smov %s884_s16 }
 0x33e   : > { %p11_p10 = scmp.ge.s32.totalorder %s14_s19, 4   ;;  %s1049_s16 = smov %s963_s24 }
 0x33f   : > { %s1050_s17 = smov %s892_s18  ;;  %s1051_s18 = smov %s1053_s20 }
 0x340   :  { %13 = sbr.rel (!%p11_p10) target bundleno = 3 (0x3), region = 213 }

// kernel: distilbert_class_forward.23
= control target key start
LH: loop header
LB: loop body
LE: loop exit
PB: predicated region body
PF: predicated region fallthrough
CT: control target
= control target key end

     0   :  { %8 = vsyncpa [#allocation3], 0  ;;  %s868_s0 = inlined_call_operand.vmem [shape: bf16[32,128], index: 0, kind: input, shape index: {}]   ;;  %s869_s1 = inlined_call_operand.hbm [shape: bf16[128,384], index: 1, kind: input, shape index: {}]   ;;  %s870_s2 = inlined_call_operand.vmem [shape: f32[1,384], index: 2, kind: input, shape index: {}]   ;;  %s871_s3 = inlined_call_operand.vmem [shape: bf16[32,384], index: 3, kind: output, shape index: {}]  }
   0x1   :  { %10 = vsyncpa [#allocation3 + $0x1], 0  ;;  %s756_s12 = smov 0   ;;  %s758_s13 = smov 0  }
   0x2   :  { %s760_s14 = smov 0   ;;  %s762_s15 = smov 0  }
   0x3   :  { %s764_s16 = smov 0   ;;  %s766_s17 = smov 0  }
   0x4 LB: > { %s509_s18 = sadd.s32 4294967295, %s731_s17   ;;  %s25_s19 = sadd.s32 1, %s727_s16  ;;  %s731_s17 = sphi %s766_s17, %s16_s17   ;;  %s727_s16 = sphi %s764_s16, %s879_s16   ;;  %s723_s15 = sphi %s762_s15, %s878_s15   ;;  %s719_s14 = sphi %s760_s14, %s877_s14   ;;  %s715_s13 = sphi %s758_s13, %s876_s13   ;;  %s711_s12 = sphi %s756_s12, %s875_s12  }
   0x5   : > { %p26_p0 = scmp.ge.s32.totalorder %s25_s19, 3  ;;  %s61_s20 = sadd.s32 1, %s719_s14 }
   0x6   : > { %p68_p1 = scmp.ne.s32.totalorder %s719_s14, %s715_s13  ;;  %p69_p2 = scmp.eq.s32.totalorder %s731_s17, 0 }
   0x7   : > { %s881_s19 = smov (%p26_p0, %s25_s19), 0  ;;  %p74_p4 = scmp.ne.s32.totalorder %s715_s13, %s711_s12 }
   0x8   : > { %p792_p3 = por %p69_p2, %p68_p1  ;;  %s58_s22 = ssub.s32 %s727_s16, %s881_s19 }
   0x9   : > { %p75_p5 = scmp.eq.s32.totalorder %s509_s18, 0  ;;  %p59_p6 = scmp.eq.s32.totalorder %s58_s22, 0 }
   0xa   : > { %p126_p7 = scmp.eq.s32.totalorder %s509_s18, 2  ;;  %p598_p10 = scmp.lt.s32.totalorder %s731_s17, 3 }
   0xb   : > { %p799_p8 = por %p75_p5, %p74_p4  ;;  %s161_s26 = sand.u32 1, %s719_s14  }
   0xc   : > { %s804_s24 = scalar_select %p59_p6, %s719_s14, %s61_s20  }
   0xd   : > { %p806_p9 = por %p126_p7, %p68_p1  ;;  %s515_s27 = sshll.u32 %s727_s16, 2 }
   0xe   : > { %s514_s28 = sshll.u32 %s161_s26, 6  ;;  %s169_s4 = scalar_lea.hbm %s869_s1, %s515_s27 }
   0xf   : > { %s170_s5 = sshll.u32 %s169_s4, 4  ;;  %s165_s6 = scalar_lea.vmem [#allocation2], %s514_s28  ;;  %s171_s5 = int_to_ptr.hbm [resolvable:$true] %s170_s5 }
  0x10   : > { %s172_s7 = sshll.u32 %s165_s6, 4  ;;  %p595_p11 = pnand %p598_p10, %p792_p3  ;;  %s173_s7 = int_to_ptr.vmem [resolvable:$true] %s172_s7 }
  0x11   : > { %p516_p12 = scmp.ge.s32.totalorder %s731_s17, 1  ;;  %s162_s8 = scalar_lea.sflag [#allocation3], %s161_s26 }
  0x12   : > { %s733_s9 = smov 192   ;;  %s734_s10 = smov 64  }
  0x13   : > { %s735_s11 = smov 4   ;;  %p186_p13 = scmp.lt.s32.totalorder %s731_s17, 4 }
  0x14   : > { %597 = dma.hbm_to_vmem [thread:$0]  (!%p595_p11), %s171_s5, 1024, %s173_s7, %s162_s8, %s733_s9, %s734_s10, %s735_s11  }
  0x15   : > { %p187_p0 = pnand %p516_p12, %p186_p13 }
  0x16   : > { %s821_s12 = sand.u32 (!%p187_p0), 1, %s715_s13  }
  0x17   : > { %190 = sbr.rel (%p187_p0) target bundleno = 211 (0xd3), region = 32  ;;  %s517_s18 = sshll.u32 (!%p187_p0), %s821_s12, 6 }
  0x18   : > { %s193_s20 = scalar_lea.sflag (!%p187_p0), [#allocation3], %s821_s12  ;;  %s196_s22 = scalar_lea.vmem (!%p187_p0), [#allocation2], %s517_s18 }
  0x1c   : > { %706 = dma.done.wait (%p799_p8), %s193_s20, 1024  }
  0x1d   : > { %708 = vsyncadd (%p799_p8), %s193_s20, 4294966272  ;;  %p233_p1 = scmp.lt.s32.totalorder %s723_s15, 2  ;;  %v572_v0 = vld [vmem:[%s196_s22 + $0x38] sm:$0xff]  ;;  %v571_v1 = vld [vmem:[%s196_s22 + $0x30] sm:$0xff]  ;;  %s518_s5 = sshll.u32 %s821_s12, 4 }
  0x1e   : > { %321 = vmatpush.bf16.msra.mxu0 %v572_v0  ;;  %584 = vmatpush.bf16.msra.mxu1 %v572_v0  ;;  %v570_v2 = vld [vmem:[%s196_s22 + $0x28] sm:$0xff]  ;;  %v569_v3 = vld [vmem:[%s196_s22 + $0x20] sm:$0xff]  ;;  %v568_v4 = vld [vmem:[%s196_s22 + $0x18] sm:$0xff]  ;;  %s226_s6 = scalar_lea.vmem [#allocation4], %s518_s5  ;;  %s560_s7 = sshll.u32 (%p806_p9), %s723_s15, 2 }
  0x1f   : > { %s831_s21 = scalar_select %p233_p1, %s723_s15, 2  ;;  %v567_v5 = vld [vmem:[%s196_s22 + $0x10] sm:$0xff]  ;;  %v566_v6 = vld [vmem:[%s196_s22 + $0x8] sm:$0xff]  ;;  %v565_v7 = vld [vmem:[%s196_s22] sm:$0xff] }
  0x20   : > { %v563_v8 = vld [vmem:[%s868_s0] sm:$0xff]  ;;  %v564_v9 = vld [vmem:[%s868_s0 + $0x8] sm:$0xff]  ;;  %s359_s10 = scalar_lea.vmem (%p806_p9), %s871_s3, %s560_s7 }
  0x21   : > { %s235_s28 = scalar_lea.vmem %s870_s2, %s831_s21 }
  0x22   : > { %322 = vmatpush.bf16.msra.mxu0 %v571_v1  ;;  %585 = vmatpush.bf16.msra.mxu1 %v571_v1  ;;  %v650_v12 = vld [vmem:[%s235_s28] ss:$0 sm:$0xff] }
  0x26   : > { %323 = vmatpush.bf16.msra.mxu0 %v570_v2  ;;  %586 = vmatpush.bf16.msra.mxu1 %v570_v2 }
  0x2a   : > { %324 = vmatpush.bf16.msra.mxu0 %v569_v3  ;;  %587 = vmatpush.bf16.msra.mxu1 %v569_v3 }
  0x2e   : > { %325 = vmatpush.bf16.msra.mxu0 %v568_v4  ;;  %588 = vmatpush.bf16.msra.mxu1 %v568_v4 }
  0x32   : > { %326 = vmatpush.bf16.msra.mxu0 %v567_v5  ;;  %589 = vmatpush.bf16.msra.mxu1 %v567_v5 }
  0x36   : > { %327 = vmatpush.bf16.msra.mxu0 %v566_v6  ;;  %590 = vmatpush.bf16.msra.mxu1 %v566_v6 }
  0x3a   : > { %328 = vmatpush.bf16.msra.mxu0 %v565_v7  ;;  %591 = vmatpush.bf16.msra.mxu1 %v565_v7 }
  0x3d   : > { %329 = vmatmul.bf16.vlgmr.msra.gmra.mxu0 %v563_v8  ;;  %334 = vmatmul.bf16.vlgmr.msra.gmra.mxu1 %v564_v9 }
  0xba   : > { %v330_v10 = vpop.f32.mrf.mxu0  ;;  %v335_v11 = vpop.f32.mrf.mxu1 }
  0xbb   : > { %v331_v15 = vadd.f32 %v650_v12, %v330_v10  ;;  %v336_v16 = vadd.f32 %v650_v12, %v335_v11 }
  0xc2   : > { %v332_v13 = vpop.f32.mrf.mxu0  ;;  %v337_v14 = vpop.f32.mrf.mxu1 }
  0xc3   : > { %v333_v17 = vadd.f32 %v650_v12, %v332_v13  ;;  %v338_v18 = vadd.f32 %v650_v12, %v337_v14 }
  0xc4   : > { %354 = sbr.rel (!%p806_p9) target bundleno = 211 (0xd3), region = 40 }
  0xc5   : > { %v576_v19 = vpack.c.bf16 %v333_v17, %v331_v15  ;;  %v581_v20 = vpack.c.bf16 %v338_v18, %v336_v16 }
  0xc7   : > { %577 = vst [vmem:[%s226_s6] sm:$0xff] %v576_v19  }
  0xc8   : > { %583 = vst [vmem:[%s226_s6 + $0x8] sm:$0xff] %v581_v20  }
  0xce   : > { %v376_v21 = vld [vmem:[%s226_s6] sm:$0xf]  ;;  %v378_v22 = vld [vmem:[%s226_s6 + $0x4] sm:$0xf] }
  0xcf   : > { %v380_v23 = vld [vmem:[%s226_s6 + $0x8] sm:$0xf]  ;;  %377 = vst [vmem:[%s359_s10] sm:$0xf] %v376_v21  ;;  %v382_v24 = vld [vmem:[%s226_s6 + $0xc] sm:$0xf] }
  0xd0   : > { %379 = vst [vmem:[%s359_s10 + $0xc] sm:$0xf] %v378_v22 }
  0xd1   : > { %381 = vst [vmem:[%s359_s10 + $0x18] sm:$0xf] %v380_v23 }
  0xd2   : > { %383 = vst [vmem:[%s359_s10 + $0x24] sm:$0xf] %v382_v24 }
  0xd3 PF: > { %s16_s17 = sadd.s32 1, %s731_s17   ;;  %s875_s12 = smov %s715_s13 }
  0xd4   : > { %p13_p2 = scmp.ge.s32.totalorder %s16_s17, 5   ;;  %s876_s13 = smov %s719_s14 }
  0xd5   : > { %s877_s14 = smov %s804_s24  ;;  %s878_s15 = smov %s727_s16 }
  0xd6   : > { %s879_s16 = smov %s881_s19  ;;  %15 = sbr.rel (!%p13_p2) target bundleno = 4 (0x4), region = 119 }
  0xdb   :  { %425 = vsyncpa [#allocation3], 1 }
  0xdc   :  { %427 = vsyncpa [#allocation3 + $0x1], 1 }

// kernel: distilbert_class_forward.20
= control target key start
LH: loop header
LB: loop body
LE: loop exit
PB: predicated region body
PF: predicated region fallthrough
CT: control target
= control target key end

     0   :  { %8 = vsyncpa [#allocation3], 0  ;;  %s1113_s0 = inlined_call_operand.vmem [shape: bf16[32,128], index: 0, kind: input, shape index: {}]   ;;  %s1114_s1 = inlined_call_operand.hbm [shape: bf16[128,512], index: 1, kind: input, shape index: {}]   ;;  %s1115_s2 = inlined_call_operand.vmem [shape: f32[1,512], index: 2, kind: input, shape index: {}]   ;;  %s1116_s3 = inlined_call_operand.vmem [shape: bf16[32,512], index: 3, kind: output, shape index: {}]  }
   0x1   :  { %10 = vsyncpa [#allocation3 + $0x1], 0  ;;  %s940_s12 = smov 0   ;;  %s942_s13 = smov 0  }
   0x2   :  { %s944_s14 = smov 0   ;;  %s946_s15 = smov 0  }
   0x3   :  { %s948_s16 = smov 0   ;;  %s950_s17 = smov 0  }
   0x4 LB: > { %s636_s18 = sadd.s32 4294967295, %s915_s17   ;;  %s25_s19 = sadd.s32 1, %s911_s16  ;;  %s915_s17 = sphi %s950_s17, %s16_s17   ;;  %s911_s16 = sphi %s948_s16, %s1124_s16   ;;  %s907_s15 = sphi %s946_s15, %s1123_s15   ;;  %s903_s14 = sphi %s944_s14, %s1122_s14   ;;  %s899_s13 = sphi %s942_s13, %s1121_s13   ;;  %s895_s12 = sphi %s940_s12, %s1120_s12  }
   0x5   : > { %p26_p0 = scmp.ge.s32.totalorder %s25_s19, 2  ;;  %s61_s20 = sadd.s32 1, %s903_s14 }
   0x6   : > { %p68_p1 = scmp.ne.s32.totalorder %s903_s14, %s899_s13  ;;  %p69_p2 = scmp.eq.s32.totalorder %s915_s17, 0 }
   0x7   : > { %s1126_s19 = smov (%p26_p0, %s25_s19), 0  ;;  %p74_p4 = scmp.ne.s32.totalorder %s899_s13, %s895_s12 }
   0x8   : > { %p976_p3 = por %p69_p2, %p68_p1  ;;  %s58_s22 = ssub.s32 %s911_s16, %s1126_s19 }
   0x9   : > { %p75_p5 = scmp.eq.s32.totalorder %s636_s18, 0  ;;  %p59_p6 = scmp.eq.s32.totalorder %s58_s22, 0 }
   0xa   : > { %p126_p7 = scmp.eq.s32.totalorder %s636_s18, 1  ;;  %p767_p10 = scmp.lt.s32.totalorder %s915_s17, 2 }
   0xb   : > { %p983_p8 = por %p75_p5, %p74_p4  ;;  %s161_s26 = sand.u32 1, %s903_s14  }
   0xc   : > { %s988_s24 = scalar_select %p59_p6, %s903_s14, %s61_s20  }
   0xd   : > { %p990_p9 = por %p126_p7, %p68_p1  ;;  %s725_s27 = sshll.u32 %s911_s16, 3 }
   0xe   : > { %s641_s28 = sshll.u32 %s161_s26, 7  ;;  %s170_s4 = scalar_lea.hbm %s1114_s1, %s725_s27 }
   0xf   : > { %s171_s5 = sshll.u32 %s170_s4, 4  ;;  %s165_s6 = scalar_lea.vmem [#allocation2], %s641_s28  ;;  %s172_s5 = int_to_ptr.hbm [resolvable:$true] %s171_s5 }
  0x10   : > { %s173_s7 = sshll.u32 %s165_s6, 4  ;;  %p764_p11 = pnand %p767_p10, %p976_p3  ;;  %s174_s7 = int_to_ptr.vmem [resolvable:$true] %s173_s7 }
  0x11   : > { %p644_p12 = scmp.ge.s32.totalorder %s915_s17, 1  ;;  %s162_s8 = scalar_lea.sflag [#allocation3], %s161_s26 }
  0x12   : > { %s917_s9 = smov 256   ;;  %s918_s10 = smov 128  }
  0x13   : > { %s919_s11 = smov 8   ;;  %p189_p13 = scmp.lt.s32.totalorder %s915_s17, 3 }
  0x14   : > { %766 = dma.hbm_to_vmem [thread:$0]  (!%p764_p11), %s172_s5, 2048, %s174_s7, %s162_s8, %s917_s9, %s918_s10, %s919_s11  }
  0x15   : > { %p190_p0 = pnand %p644_p12, %p189_p13 }
  0x16   : > { %s1005_s12 = sand.u32 (!%p190_p0), 1, %s899_s13  }
  0x17   : > { %193 = sbr.rel (%p190_p0) target bundleno = 238 (0xee), region = 32  ;;  %s645_s18 = sshll.u32 (!%p190_p0), %s1005_s12, 7 }
  0x18   : > { %s196_s20 = scalar_lea.sflag (!%p190_p0), [#allocation3], %s1005_s12  ;;  %s1009_s22 = scalar_lea.vmem (!%p190_p0), [#allocation2], %s645_s18 }
  0x1c   : > { %890 = dma.done.wait (%p983_p8), %s196_s20, 2048  }
  0x1d   : > { %892 = vsyncadd (%p983_p8), %s196_s20, 4294965248  ;;  %v714_v0 = vld [vmem:[%s1009_s22 + $0x70] sm:$0xf]  ;;  %v743_v1 = vld [vmem:[%s1009_s22 + $0x74] sm:$0xf0]  ;;  %s647_s28 = sshll.u32 %s907_s15, 1 }
  0x1e   : > { %v742_v2 = vld [vmem:[%s1009_s22 + $0x74] sm:$0xf]  ;;  %v715_v3 = vor.u32 %v743_v1, %v714_v0  ;;  %v716_v4 = vld [vmem:[%s1009_s22 + $0x78] sm:$0xf0]  ;;  %v706_v5 = vld [vmem:[%s1009_s22 + $0x60] sm:$0xf] }
  0x1f   : > { %v741_v6 = vld [vmem:[%s1009_s22 + $0x64] sm:$0xf0]  ;;  %v719_v7 = vor.u32 %v742_v2, %v716_v4  ;;  %v740_v8 = vld [vmem:[%s1009_s22 + $0x64] sm:$0xf]  ;;  %v708_v9 = vld [vmem:[%s1009_s22 + $0x68] sm:$0xf0] }
  0x20   : > { %363 = vmatpush.bf16.msra.mxu0 %v715_v3  ;;  %745 = vmatpush.bf16.msra.mxu2 %v715_v3  ;;  %v707_v10 = vor.u32 %v741_v6, %v706_v5  ;;  %v711_v11 = vor.u32 %v740_v8, %v708_v9  ;;  %v698_v12 = vld [vmem:[%s1009_s22 + $0x50] sm:$0xf]  ;;  %v739_v13 = vld [vmem:[%s1009_s22 + $0x54] sm:$0xf0]  ;;  %v738_v14 = vld [vmem:[%s1009_s22 + $0x54] sm:$0xf] }
  0x21   : > { %382 = vmatpush.bf16.msra.mxu1 %v719_v7  ;;  %753 = vmatpush.bf16.msra.mxu3 %v719_v7  ;;  %v700_v15 = vld [vmem:[%s1009_s22 + $0x58] sm:$0xf0]  ;;  %v699_v16 = vor.u32 %v739_v13, %v698_v12  ;;  %v690_v18 = vld [vmem:[%s1009_s22 + $0x40] sm:$0xf]  ;;  %v737_v19 = vld [vmem:[%s1009_s22 + $0x44] sm:$0xf0] }
  0x22   : > { %v703_v17 = vor.u32 %v738_v14, %v700_v15  ;;  %v736_v20 = vld [vmem:[%s1009_s22 + $0x44] sm:$0xf]  ;;  %v692_v21 = vld [vmem:[%s1009_s22 + $0x48] sm:$0xf0]  ;;  %v691_v22 = vor.u32 %v737_v19, %v690_v18  ;;  %v682_v24 = vld [vmem:[%s1009_s22 + $0x30] sm:$0xf] }
  0x23   : > { %v695_v23 = vor.u32 %v736_v20, %v692_v21  ;;  %v735_v25 = vld [vmem:[%s1009_s22 + $0x34] sm:$0xf0]  ;;  %v734_v26 = vld [vmem:[%s1009_s22 + $0x34] sm:$0xf]  ;;  %v684_v27 = vld [vmem:[%s1009_s22 + $0x38] sm:$0xf0] }
  0x24   : > { %364 = vmatpush.bf16.msra.mxu0 %v707_v10  ;;  %746 = vmatpush.bf16.msra.mxu2 %v707_v10  ;;  %v683_v28 = vor.u32 %v735_v25, %v682_v24  ;;  %v687_v29 = vor.u32 %v734_v26, %v684_v27  ;;  %v674_v30 = vld [vmem:[%s1009_s22 + $0x20] sm:$0xf]  ;;  %v733_v31 = vld [vmem:[%s1009_s22 + $0x24] sm:$0xf0]  ;;  %v732_v32 = vld [vmem:[%s1009_s22 + $0x24] sm:$0xf] }
  0x25   : > { %383 = vmatpush.bf16.msra.mxu1 %v711_v11  ;;  %754 = vmatpush.bf16.msra.mxu3 %v711_v11  ;;  %v676_v33 = vld [vmem:[%s1009_s22 + $0x28] sm:$0xf0]  ;;  %v675_v34 = vor.u32 %v733_v31, %v674_v30  ;;  %v666_v36 = vld [vmem:[%s1009_s22 + $0x10] sm:$0xf]  ;;  %v731_v37 = vld [vmem:[%s1009_s22 + $0x14] sm:$0xf0] }
  0x26   : > { %v679_v35 = vor.u32 %v732_v32, %v676_v33  ;;  %v730_v38 = vld [vmem:[%s1009_s22 + $0x14] sm:$0xf]  ;;  %v668_v39 = vld [vmem:[%s1009_s22 + $0x18] sm:$0xf0]  ;;  %v667_v40 = vor.u32 %v731_v37, %v666_v36  ;;  %v658_v42 = vld [vmem:[%s1009_s22] sm:$0xf] }
  0x27   : > { %v671_v41 = vor.u32 %v730_v38, %v668_v39  ;;  %v729_v43 = vld [vmem:[%s1009_s22 + $0x4] sm:$0xf0]  ;;  %v728_v44 = vld [vmem:[%s1009_s22 + $0x4] sm:$0xf]  ;;  %v660_v45 = vld [vmem:[%s1009_s22 + $0x8] sm:$0xf0] }
  0x28   : > { %365 = vmatpush.bf16.msra.mxu0 %v699_v16  ;;  %747 = vmatpush.bf16.msra.mxu2 %v699_v16  ;;  %v659_v46 = vor.u32 %v729_v43, %v658_v42  ;;  %v663_v47 = vor.u32 %v728_v44, %v660_v45  ;;  %v726_v48 = vld [vmem:[%s1113_s0] sm:$0xff]  ;;  %v727_v49 = vld [vmem:[%s1113_s0 + $0x8] sm:$0xff]  ;;  %p239_p1 = scmp.lt.s32.totalorder %s647_s28, 3  ;;  %s646_s5 = sshll.u32 %s1005_s12, 5 }
  0x29   : > { %384 = vmatpush.bf16.msra.mxu1 %v703_v17  ;;  %755 = vmatpush.bf16.msra.mxu3 %v703_v17  ;;  %s1076_s6 = scalar_lea.vmem [#allocation4], %s646_s5  ;;  %s744_s7 = sshll.u32 (%p990_p9), %s907_s15, 3 }
  0x2a   : > { %s1128_s28 = smov (!%p239_p1, %s647_s28), 3  ;;  %s493_s10 = scalar_lea.vmem (%p990_p9), %s1116_s3, %s744_s7 }
  0x2b   : > { %s241_s4 = scalar_lea.vmem %s1115_s2, %s1128_s28 }
  0x2c   : > { %366 = vmatpush.bf16.msra.mxu0 %v691_v22  ;;  %748 = vmatpush.bf16.msra.mxu2 %v691_v22  ;;  %v265_v50 = vld [vmem:[%s241_s4] sm:$0x3] }
  0x2d   : > { %385 = vmatpush.bf16.msra.mxu1 %v695_v23  ;;  %756 = vmatpush.bf16.msra.mxu3 %v695_v23  ;;  %v267_v51 = vperm.slane %v265_v50, 0  ;;  %v268_v52 = vperm.slane %v265_v50, 1 }
  0x30   : > { %367 = vmatpush.bf16.msra.mxu0 %v683_v28  ;;  %749 = vmatpush.bf16.msra.mxu2 %v683_v28 }
  0x31   : > { %386 = vmatpush.bf16.msra.mxu1 %v687_v29  ;;  %757 = vmatpush.bf16.msra.mxu3 %v687_v29 }
  0x34   : > { %368 = vmatpush.bf16.msra.mxu0 %v675_v34  ;;  %750 = vmatpush.bf16.msra.mxu2 %v675_v34 }
  0x35   : > { %387 = vmatpush.bf16.msra.mxu1 %v679_v35  ;;  %758 = vmatpush.bf16.msra.mxu3 %v679_v35 }
  0x38   : > { %369 = vmatpush.bf16.msra.mxu0 %v667_v40  ;;  %751 = vmatpush.bf16.msra.mxu2 %v667_v40 }
  0x39   : > { %388 = vmatpush.bf16.msra.mxu1 %v671_v41  ;;  %759 = vmatpush.bf16.msra.mxu3 %v671_v41 }
  0x3c   : > { %370 = vmatpush.bf16.msra.mxu0 %v659_v46  ;;  %752 = vmatpush.bf16.msra.mxu2 %v659_v46 }
  0x3d   : > { %389 = vmatpush.bf16.msra.mxu1 %v663_v47  ;;  %760 = vmatpush.bf16.msra.mxu3 %v663_v47 }
  0x3f   : > { %371 = vmatmul.bf16.vlgmr.msra.gmra.mxu0 %v726_v48  ;;  %376 = vmatmul.bf16.vlgmr.msra.gmra.mxu2 %v727_v49 }
  0x40   : > { %390 = vmatmul.bf16.vlgmr.msra.gmra.mxu1 %v726_v48  ;;  %395 = vmatmul.bf16.vlgmr.msra.gmra.mxu3 %v727_v49 }
  0xbc   : > { %v372_v53 = vpop.f32.mrf.mxu0 }
  0xbd   : > { %v373_v54 = vadd.f32 %v372_v53, %v267_v51  ;;  %v391_v55 = vpop.f32.mrf.mxu1 }
  0xbe   : > { %v392_v56 = vadd.f32 %v391_v55, %v268_v52 }
  0xbf   : > { %v409_v57 = vmul.f32 0.044715, %v373_v54  ;;  %v401_v36 = vmul.f32 0.5, %v373_v54 }
  0xc0   : > { %v410_v58 = vmul.f32 0.044715, %v392_v56  ;;  %v402_v43 = vmul.f32 0.5, %v392_v56 }
  0xc1   : > { %v417_v59 = vmul.f32 %v409_v57, %v373_v54 }
  0xc2   : > { %v418_v60 = vmul.f32 %v410_v58, %v392_v56  ;;  %v377_v61 = vpop.f32.mrf.mxu2 }
  0xc3   : > { %v425_v62 = vmul.f32 %v417_v59, %v373_v54  ;;  %v378_v63 = vadd.f32 %v377_v61, %v267_v51  ;;  %v396_v0 = vpop.f32.mrf.mxu3 }
  0xc4   : > { %v426_v1 = vmul.f32 %v418_v60, %v392_v56  ;;  %v1057_v2 = vadd.f32 %v396_v0, %v268_v52  ;;  %v374_v3 = vpop.f32.mrf.mxu0 }
  0xc5   : > { %v433_v4 = vadd.f32 %v425_v62, %v373_v54  ;;  %v413_v5 = vmul.f32 0.044715, %v378_v63  ;;  %v1059_v6 = vadd.f32 %v374_v3, %v267_v51  ;;  %v393_v7 = vpop.f32.mrf.mxu1  ;;  %v405_v55 = vmul.f32 0.5, %v378_v63 }
  0xc6   : > { %v434_v8 = vadd.f32 %v426_v1, %v392_v56  ;;  %v414_v9 = vmul.f32 0.044715, %v1057_v2  ;;  %v1062_v10 = vadd.f32 %v393_v7, %v268_v52  ;;  %v406_v56 = vmul.f32 0.5, %v1057_v2 }
  0xc7   : > { %v441_v11 = vmul.f32 0.7978846, %v433_v4  ;;  %v421_v12 = vmul.f32 %v413_v5, %v378_v63  ;;  %v411_v13 = vmul.f32 0.044715, %v1059_v6  ;;  %v403_v0 = vmul.f32 0.5, %v1059_v6 }
  0xc8   : > { %v442_v14 = vmul.f32 0.7978846, %v434_v8  ;;  %v422_v15 = vmul.f32 %v414_v9, %v1057_v2  ;;  %v412_v16 = vmul.f32 0.044715, %v1062_v10  ;;  %v404_v3 = vmul.f32 0.5, %v1062_v10 }
  0xc9   : > { %819 = vtanh.f32 %v441_v11  ;;  %v429_v17 = vmul.f32 %v421_v12, %v378_v63  ;;  %v419_v18 = vmul.f32 %v411_v13, %v1059_v6 }
  0xca   : > { %821 = vtanh.f32 %v442_v14  ;;  %v430_v19 = vmul.f32 %v422_v15, %v1057_v2  ;;  %v420_v20 = vmul.f32 %v412_v16, %v1062_v10  ;;  %v379_v21 = vpop.f32.mrf.mxu2 }
  0xcb   : > { %v437_v22 = vadd.f32 %v429_v17, %v378_v63  ;;  %v427_v23 = vmul.f32 %v419_v18, %v1059_v6  ;;  %v380_v24 = vadd.f32 %v379_v21, %v267_v51  ;;  %v398_v25 = vpop.f32.mrf.mxu3 }
  0xcc   : > { %v438_v26 = vadd.f32 %v430_v19, %v1057_v2  ;;  %v428_v27 = vmul.f32 %v420_v20, %v1062_v10  ;;  %v399_v28 = vadd.f32 %v398_v25, %v268_v52 }
  0xcd   : > { %v445_v29 = vmul.f32 0.7978846, %v437_v22  ;;  %v435_v30 = vadd.f32 %v427_v23, %v1059_v6  ;;  %v415_v31 = vmul.f32 0.044715, %v380_v24  ;;  %v407_v12 = vmul.f32 0.5, %v380_v24 }
  0xce   : > { %v446_v32 = vmul.f32 0.7978846, %v438_v26  ;;  %v436_v33 = vadd.f32 %v428_v27, %v1062_v10  ;;  %v416_v34 = vmul.f32 0.044715, %v399_v28  ;;  %v408_v14 = vmul.f32 0.5, %v399_v28 }
  0xcf   : > { %v820_v35 = vpop.eup %819  ;;  %823 = vtanh.f32 %v445_v29  ;;  %v443_v37 = vmul.f32 0.7978846, %v435_v30  ;;  %v423_v38 = vmul.f32 %v415_v31, %v380_v24 }
  0xd0   : > { %v822_v39 = vpop.eup %821  ;;  %v457_v40 = vadd.f32 1.0, %v820_v35  ;;  %825 = vtanh.f32 %v446_v32  ;;  %v444_v41 = vmul.f32 0.7978846, %v436_v33  ;;  %v424_v42 = vmul.f32 %v416_v34, %v399_v28 }
  0xd1   : > { %v458_v44 = vadd.f32 1.0, %v822_v39  ;;  %827 = vtanh.f32 %v443_v37  ;;  %v431_v45 = vmul.f32 %v423_v38, %v380_v24 }
  0xd2   : > { %v465_v46 = vmul.f32 %v457_v40, %v401_v36  ;;  %829 = vtanh.f32 %v444_v41  ;;  %v432_v47 = vmul.f32 %v424_v42, %v399_v28 }
  0xd3   : > { %v466_v48 = vmul.f32 %v458_v44, %v402_v43  ;;  %v439_v49 = vadd.f32 %v431_v45, %v380_v24 }
  0xd4   : > { %v440_v50 = vadd.f32 %v432_v47, %v399_v28 }
  0xd5   : > { %v824_v51 = vpop.eup %823  ;;  %v473_v52 = vpack.c.bf16 %v466_v48, %v465_v46  ;;  %v447_v53 = vmul.f32 0.7978846, %v439_v49 }
  0xd6   : > { %v826_v54 = vpop.eup %825  ;;  %v461_v57 = vadd.f32 1.0, %v824_v51  ;;  %v448_v58 = vmul.f32 0.7978846, %v440_v50 }
  0xd7   : > { %v828_v59 = vpop.eup %827  ;;  %477 = vst [vmem:[%s1076_s6] sm:$0xff] %v473_v52  ;;  %v462_v60 = vadd.f32 1.0, %v826_v54  ;;  %831 = vtanh.f32 %v447_v53 }
  0xd8   : > { %v830_v61 = vpop.eup %829  ;;  %v469_v62 = vmul.f32 %v461_v57, %v405_v55  ;;  %v459_v1 = vadd.f32 1.0, %v828_v59  ;;  %833 = vtanh.f32 %v448_v58 }
  0xd9   : > { %v470_v63 = vmul.f32 %v462_v60, %v406_v56  ;;  %v460_v4 = vadd.f32 1.0, %v830_v61 }
  0xda   : > { %v467_v5 = vmul.f32 %v459_v1, %v403_v0 }
  0xdb   : > { %v475_v7 = vpack.c.bf16 %v470_v63, %v469_v62  ;;  %v468_v8 = vmul.f32 %v460_v4, %v404_v3 }
  0xdd   : > { %v832_v9 = vpop.eup %831  ;;  %479 = vst [vmem:[%s1076_s6 + $0x10] sm:$0xff] %v475_v7  ;;  %v474_v2 = vpack.c.bf16 %v468_v8, %v467_v5 }
  0xde   : > { %v834_v11 = vpop.eup %833  ;;  %v463_v13 = vadd.f32 1.0, %v832_v9  ;;  %v528_v10 = vld [vmem:[%s1076_s6] sm:$0xff] (%p990_p9) }
  0xdf   : > { %478 = vst [vmem:[%s1076_s6 + $0x8] sm:$0xff] %v474_v2  ;;  %v464_v15 = vadd.f32 1.0, %v834_v11 }
  0xe0   : > { %v471_v6 = vmul.f32 %v463_v13, %v407_v12  ;;  %529 = vst [vmem:[%s493_s10] sm:$0xff] (%p990_p9), %v528_v10 }
  0xe1   : > { %v472_v16 = vmul.f32 %v464_v15, %v408_v14  ;;  %487 = sbr.rel (!%p990_p9) target bundleno = 238 (0xee), region = 40 }
  0xe3   : > { %v476_v17 = vpack.c.bf16 %v472_v16, %v471_v6 }
  0xe4   : > { %v532_v19 = vld [vmem:[%s1076_s6 + $0x10] sm:$0xff] (%p990_p9) }
  0xe5   : > { %480 = vst [vmem:[%s1076_s6 + $0x18] sm:$0xff] %v476_v17 }
  0xe6   : > { %v530_v18 = vld [vmem:[%s1076_s6 + $0x8] sm:$0xff]  ;;  %533 = vst [vmem:[%s493_s10 + $0x20] sm:$0xff] %v532_v19 }
  0xe7   : > { %531 = vst [vmem:[%s493_s10 + $0x10] sm:$0xff] %v530_v18 }
  0xec   : > { %v534_v20 = vld [vmem:[%s1076_s6 + $0x18] sm:$0xff] }
  0xed   : > { %535 = vst [vmem:[%s493_s10 + $0x30] sm:$0xff] %v534_v20 }
  0xee PF: > { %s16_s17 = sadd.s32 1, %s915_s17   ;;  %s1120_s12 = smov %s899_s13 }
  0xef   : > { %p13_p2 = scmp.ge.s32.totalorder %s16_s17, 4   ;;  %s1121_s13 = smov %s903_s14 }
  0xf0   : > { %s1122_s14 = smov %s988_s24  ;;  %s1123_s15 = smov %s911_s16 }
  0xf1   : > { %s1124_s16 = smov %s1126_s19  ;;  %15 = sbr.rel (!%p13_p2) target bundleno = 4 (0x4), region = 116 }
  0xf6   :  { %551 = vsyncpa [#allocation3], 1 }
  0xf7   :  { %553 = vsyncpa [#allocation3 + $0x1], 1 }

// kernel: distilbert_class_forward.21
= control target key start
LH: loop header
LB: loop body
LE: loop exit
PB: predicated region body
PF: predicated region fallthrough
CT: control target
= control target key end

     0   :  { %8 = vsyncpa [#allocation3], 0  ;;  %s668_s15 = smov [#allocation2]   ;;  %s669_s17 = smov 64   ;;  %s751_s0 = inlined_call_operand.vmem [shape: bf16[32,512], index: 0, kind: input, shape index: {}]   ;;  %s752_s1 = inlined_call_operand.hbm [shape: bf16[512,128], index: 1, kind: input, shape index: {}]   ;;  %s753_s2 = inlined_call_operand.vmem [shape: f32[1,128], index: 2, kind: input, shape index: {}]   ;;  %s754_s3 = inlined_call_operand.vmem [shape: bf16[32,128], index: 3, kind: output, shape index: {}]  }
   0x1   :  { %s15_s14 = sshll.u32 %s752_s1, 4  ;;  %s17_s16 = sshll.u32 %s668_s15, 4  ;;  %s16_s14 = int_to_ptr.hbm [resolvable:$true] %s15_s14  ;;  %s18_s16 = int_to_ptr.vmem [resolvable:$true] %s17_s16 }
   0x2   :  { %s670_s18 = smov 4  }
   0x3   :  { %23 = dma.hbm_to_vmem [thread:$0]  %s16_s14, 4096, %s18_s16, [#allocation3], %s669_s17, %s669_s17, %s670_s18  }
   0x4   :  { %666 = dma.done.wait [#allocation3], 4096  }
   0x5   :  { %667 = vsyncadd [#allocation3], 4294963200  ;;  %v602_v0 = vld [vmem:[#allocation2 + $0x38] sm:$0xff]  ;;  %v601_v4 = vld [vmem:[#allocation2 + $0x30] sm:$0xff] }
   0x6   :  { %v610_v1 = vld [vmem:[#allocation2 + $0x78] sm:$0xff]  ;;  %338 = vmatpush.bf16.msra.mxu0 %v602_v0  ;;  %v609_v5 = vld [vmem:[#allocation2 + $0x70] sm:$0xff]  ;;  %v600_v8 = vld [vmem:[#allocation2 + $0x28] sm:$0xff] }
   0x7   :  { %v618_v2 = vld [vmem:[#allocation2 + $0xb8] sm:$0xff]  ;;  %357 = vmatpush.bf16.msra.mxu1 %v610_v1  ;;  %v617_v6 = vld [vmem:[#allocation2 + $0xb0] sm:$0xff]  ;;  %v608_v9 = vld [vmem:[#allocation2 + $0x68] sm:$0xff] }
   0x8   :  { %v626_v3 = vld [vmem:[#allocation2 + $0xf8] sm:$0xff]  ;;  %376 = vmatpush.bf16.msra.mxu2 %v618_v2  ;;  %v625_v7 = vld [vmem:[#allocation2 + $0xf0] sm:$0xff]  ;;  %v616_v10 = vld [vmem:[#allocation2 + $0xa8] sm:$0xff] }
   0x9   :  { %395 = vmatpush.bf16.msra.mxu3 %v626_v3  ;;  %v624_v11 = vld [vmem:[#allocation2 + $0xe8] sm:$0xff]  ;;  %v599_v12 = vld [vmem:[#allocation2 + $0x20] sm:$0xff]  ;;  %v598_v16 = vld [vmem:[#allocation2 + $0x18] sm:$0xff] }
   0xa   :  { %339 = vmatpush.bf16.msra.mxu0 %v601_v4  ;;  %v607_v13 = vld [vmem:[#allocation2 + $0x60] sm:$0xff]  ;;  %v606_v17 = vld [vmem:[#allocation2 + $0x58] sm:$0xff]  ;;  %v597_v20 = vld [vmem:[#allocation2 + $0x10] sm:$0xff] }
   0xb   :  { %358 = vmatpush.bf16.msra.mxu1 %v609_v5  ;;  %v615_v14 = vld [vmem:[#allocation2 + $0xa0] sm:$0xff]  ;;  %v614_v18 = vld [vmem:[#allocation2 + $0x98] sm:$0xff]  ;;  %v605_v21 = vld [vmem:[#allocation2 + $0x50] sm:$0xff] }
   0xc   :  { %377 = vmatpush.bf16.msra.mxu2 %v617_v6  ;;  %v623_v15 = vld [vmem:[#allocation2 + $0xe0] sm:$0xff]  ;;  %v622_v19 = vld [vmem:[#allocation2 + $0xd8] sm:$0xff]  ;;  %v613_v22 = vld [vmem:[#allocation2 + $0x90] sm:$0xff] }
   0xd   :  { %396 = vmatpush.bf16.msra.mxu3 %v625_v7  ;;  %v621_v23 = vld [vmem:[#allocation2 + $0xd0] sm:$0xff]  ;;  %v596_v24 = vld [vmem:[#allocation2 + $0x8] sm:$0xff]  ;;  %v595_v28 = vld [vmem:[#allocation2] sm:$0xff] }
   0xe   :  { %340 = vmatpush.bf16.msra.mxu0 %v600_v8  ;;  %v604_v25 = vld [vmem:[#allocation2 + $0x48] sm:$0xff]  ;;  %v603_v29 = vld [vmem:[#allocation2 + $0x40] sm:$0xff]  ;;  %v589_v33 = vld [vmem:[%s751_s0 + $0xc] sm:$0xf0] }
   0xf   :  { %359 = vmatpush.bf16.msra.mxu1 %v608_v9  ;;  %v612_v26 = vld [vmem:[#allocation2 + $0x88] sm:$0xff]  ;;  %v611_v30 = vld [vmem:[#allocation2 + $0x80] sm:$0xff]  ;;  %v431_v35 = vld [vmem:[%s751_s0 + $0x10] sm:$0xf0] }
  0x10   :  { %378 = vmatpush.bf16.msra.mxu2 %v616_v10  ;;  %v620_v27 = vld [vmem:[#allocation2 + $0xc8] sm:$0xff]  ;;  %v619_v31 = vld [vmem:[#allocation2 + $0xc0] sm:$0xff]  ;;  %v590_v37 = vld [vmem:[%s751_s0 + $0x14] sm:$0xf0] }
  0x11   :  { %397 = vmatpush.bf16.msra.mxu3 %v624_v11  ;;  %v429_v32 = vld [vmem:[%s751_s0] sm:$0xf]  ;;  %v587_v34 = vld [vmem:[%s751_s0 + $0x4] sm:$0xf]  ;;  %v437_v36 = vld [vmem:[%s751_s0 + $0x8] sm:$0xf] }
  0x12   :  { %341 = vmatpush.bf16.msra.mxu0 %v599_v12  ;;  %v588_v38 = vld [vmem:[%s751_s0 + $0xc] sm:$0xf]  ;;  %v439_v39 = vld [vmem:[%s751_s0 + $0x18] sm:$0xf0]  ;;  %v430_v40 = vor.u32 %v589_v33, %v429_v32  ;;  %v434_v41 = vor.u32 %v587_v34, %v431_v35  ;;  %v438_v42 = vor.u32 %v590_v37, %v437_v36  ;;  %v445_v44 = vld [vmem:[%s751_s0 + $0x20] sm:$0xf] }
  0x13   :  { %360 = vmatpush.bf16.msra.mxu1 %v607_v13  ;;  %v442_v43 = vor.u32 %v588_v38, %v439_v39  ;;  %v593_v45 = vld [vmem:[%s751_s0 + $0x2c] sm:$0xf0]  ;;  %v591_v46 = vld [vmem:[%s751_s0 + $0x24] sm:$0xf]  ;;  %v447_v47 = vld [vmem:[%s751_s0 + $0x30] sm:$0xf0] }
  0x14   :  { %379 = vmatpush.bf16.msra.mxu2 %v615_v14  ;;  %v453_v48 = vld [vmem:[%s751_s0 + $0x28] sm:$0xf]  ;;  %v594_v49 = vld [vmem:[%s751_s0 + $0x34] sm:$0xf0]  ;;  %v592_v50 = vld [vmem:[%s751_s0 + $0x2c] sm:$0xf]  ;;  %v446_v52 = vor.u32 %v593_v45, %v445_v44  ;;  %v450_v53 = vor.u32 %v591_v46, %v447_v47 }
  0x15   :  { %398 = vmatpush.bf16.msra.mxu3 %v623_v15  ;;  %v455_v51 = vld [vmem:[%s751_s0 + $0x38] sm:$0xf0]  ;;  %v454_v54 = vor.u32 %v594_v49, %v453_v48  ;;  %v641_v58 = vld [vmem:[%s753_s2] ss:$0 sm:$0xff] }
  0x16   :  { %342 = vmatpush.bf16.msra.mxu0 %v598_v16  ;;  %v458_v55 = vor.u32 %v592_v50, %v455_v51 }
  0x17   :  { %361 = vmatpush.bf16.msra.mxu1 %v606_v17 }
  0x18   :  { %380 = vmatpush.bf16.msra.mxu2 %v614_v18 }
  0x19   :  { %399 = vmatpush.bf16.msra.mxu3 %v622_v19 }
  0x1a   :  { %343 = vmatpush.bf16.msra.mxu0 %v597_v20 }
  0x1b   :  { %362 = vmatpush.bf16.msra.mxu1 %v605_v21 }
  0x1c   :  { %381 = vmatpush.bf16.msra.mxu2 %v613_v22 }
  0x1d   :  { %400 = vmatpush.bf16.msra.mxu3 %v621_v23 }
  0x1e   :  { %344 = vmatpush.bf16.msra.mxu0 %v596_v24 }
  0x1f   :  { %363 = vmatpush.bf16.msra.mxu1 %v604_v25 }
  0x20   :  { %382 = vmatpush.bf16.msra.mxu2 %v612_v26 }
  0x21   :  { %401 = vmatpush.bf16.msra.mxu3 %v620_v27 }
  0x22   :  { %345 = vmatpush.bf16.msra.mxu0 %v595_v28 }
  0x23   :  { %364 = vmatpush.bf16.msra.mxu1 %v603_v29 }
  0x24   :  { %383 = vmatpush.bf16.msra.mxu2 %v611_v30 }
  0x25   :  { %402 = vmatpush.bf16.msra.mxu3 %v619_v31  ;;  %346 = vmatmul.bf16.vlgmr.msra.gmra.mxu0 %v430_v40 }
  0x26   :  { %365 = vmatmul.bf16.vlgmr.msra.gmra.mxu1 %v434_v41 }
  0x27   :  { %384 = vmatmul.bf16.vlgmr.msra.gmra.mxu2 %v438_v42 }
  0x28   :  { %403 = vmatmul.bf16.vlgmr.msra.gmra.mxu3 %v442_v43 }
  0x35   :  { %351 = vmatmul.bf16.gmra.mxu0 %v446_v52 }
  0x36   :  { %370 = vmatmul.bf16.gmra.mxu1 %v450_v53 }
  0x37   :  { %389 = vmatmul.bf16.gmra.mxu2 %v454_v54 }
  0x38   :  { %408 = vmatmul.bf16.gmra.mxu3 %v458_v55 }
  0xa2   :  { %v347_v56 = vpop.f32.mrf.mxu0 }
  0xa3   :  { %v366_v57 = vpop.f32.mrf.mxu1  ;;  %v348_v59 = vadd.f32 %v641_v58, %v347_v56 }
  0xa5   :  { %v367_v0 = vadd.f32 %v366_v57, %v348_v59 }
  0xaa   :  { %v385_v60 = vpop.f32.mrf.mxu2  ;;  %v349_v62 = vpop.f32.mrf.mxu0 }
  0xab   :  { %v404_v61 = vpop.f32.mrf.mxu3  ;;  %v368_v63 = vpop.f32.mrf.mxu1  ;;  %v350_v1 = vadd.f32 %v641_v58, %v349_v62  ;;  %v386_v2 = vadd.f32 %v385_v60, %v367_v0 }
  0xad   :  { %v369_v3 = vadd.f32 %v368_v63, %v350_v1  ;;  %v405_v8 = vadd.f32 %v404_v61, %v386_v2 }
  0xb2   :  { %v387_v4 = vpop.f32.mrf.mxu2  ;;  %v352_v7 = vpop.f32.mrf.mxu0 }
  0xb3   :  { %v406_v5 = vpop.f32.mrf.mxu3  ;;  %v388_v6 = vadd.f32 %v387_v4, %v369_v3  ;;  %v371_v10 = vpop.f32.mrf.mxu1  ;;  %v353_v12 = vadd.f32 %v641_v58, %v352_v7 }
  0xb5   :  { %v407_v9 = vadd.f32 %v406_v5, %v388_v6  ;;  %v372_v16 = vadd.f32 %v371_v10, %v353_v12 }
  0xb7   :  { %v630_v11 = vpack.c.bf16 %v407_v9, %v405_v8 }
  0xb9   :  { %631 = vst [vmem:[%s754_s3] sm:$0xff] %v630_v11  }
  0xba   :  { %v390_v13 = vpop.f32.mrf.mxu2  ;;  %v354_v15 = vpop.f32.mrf.mxu0 }
  0xbb   :  { %v409_v14 = vpop.f32.mrf.mxu3  ;;  %v355_v17 = vadd.f32 %v641_v58, %v354_v15  ;;  %v373_v18 = vpop.f32.mrf.mxu1  ;;  %v391_v19 = vadd.f32 %v390_v13, %v372_v16 }
  0xbd   :  { %v374_v20 = vadd.f32 %v373_v18, %v355_v17  ;;  %v410_v24 = vadd.f32 %v409_v14, %v391_v19 }
  0xc2   :  { %v392_v21 = vpop.f32.mrf.mxu2 }
  0xc3   :  { %v393_v22 = vadd.f32 %v392_v21, %v374_v20  ;;  %v411_v23 = vpop.f32.mrf.mxu3 }
  0xc5   :  { %v412_v25 = vadd.f32 %v411_v23, %v393_v22 }
  0xc7   :  { %v635_v26 = vpack.c.bf16 %v412_v25, %v410_v24 }
  0xc9   :  { %637 = vst [vmem:[%s754_s3 + $0x8] sm:$0xff] %v635_v26  }
  0xca   :  { %426 = vsyncpa [#allocation3], 1 }

</bundles_post_ra>
